<compile_context>
chip_gen: v5e
topology: v5e:2x2
jax: 0.10.0
libtpu: 0.0.40
codegen_flags: <defaults>
</compile_context>

<pallas_src>
import functools

import numpy as np
import jax
import jax.numpy as jnp
from jax import lax
from jax.experimental import pallas as pl
from jax.experimental.pallas import tpu as pltpu


# ---------------- fused Pallas kernel ----------------

def _bottleneck_kernel(x_ctr_ref, x_top_ref, x_bot_ref,
                       w1_ref, w2_ref, w3_ref,
                       o_ref, x1pad_ref, *, use_im2col):
    # x_ctr_ref : (1, TH, W, Cin)   this row block's input rows
    # x_top_ref : (1, 1, W, Cin)    input row above the block (clamped at edge)
    # x_bot_ref : (1, 1, W, Cin)    input row below the block (clamped at edge)
    # w1_ref    : (Cin, P)
    # w2_ref    : (9*P, P) im2col   OR  (9, P, P) per-tap
    # w3_ref    : (P, Cout)
    # o_ref     : (1, TH, W, Cout)
    # x1pad_ref : (TH+2, W+2, P)    conv1 output + 1-px halo, compute dtype
    j = pl.program_id(1)
    nH = pl.num_programs(1)
    _, TH, W, Cout = o_ref.shape
    Cin = x_ctr_ref.shape[3]
    P = w1_ref.shape[1]
    cdt = x1pad_ref.dtype

    # ---- zero only what the writes below do not cover: the two padded
    #      columns; halo rows are zeroed only at image edges.
    zcol = jnp.zeros((TH + 2, 1, P), dtype=cdt)
    x1pad_ref[:, 0:1, :] = zcol
    x1pad_ref[:, W + 1:W + 2, :] = zcol

    # ---- conv1 (1x1) + ReLU for the TH interior rows ------------------------
    xc = x_ctr_ref[...].reshape(TH * W, Cin)
    y1 = jnp.maximum(
        jnp.dot(xc, w1_ref[...], preferred_element_type=jnp.float32), 0.0)
    x1pad_ref[1:TH + 1, 1:W + 1, :] = y1.reshape(TH, W, P).astype(cdt)

    # ---- top halo row --------------------------------------------------------
    @pl.when(j == 0)
    def _top_zero():
        x1pad_ref[0:1, 1:W + 1, :] = jnp.zeros((1, W, P), dtype=cdt)

    @pl.when(j > 0)
    def _top_halo():
        xt = x_top_ref[...].reshape(W, Cin)
        yt = jnp.maximum(
            jnp.dot(xt, w1_ref[...], preferred_element_type=jnp.float32), 0.0)
        x1pad_ref[0:1, 1:W + 1, :] = yt.reshape(1, W, P).astype(cdt)

    # ---- bottom halo row -----------------------------------------------------
    @pl.when(j == nH - 1)
    def _bot_zero():
        x1pad_ref[TH + 1:TH + 2, 1:W + 1, :] = jnp.zeros((1, W, P), dtype=cdt)

    @pl.when(j < nH - 1)
    def _bot_halo():
        xb = x_bot_ref[...].reshape(W, Cin)
        yb = jnp.maximum(
            jnp.dot(xb, w1_ref[...], preferred_element_type=jnp.float32), 0.0)
        x1pad_ref[TH + 1:TH + 2, 1:W + 1, :] = yb.reshape(1, W, P).astype(cdt)

    # ---- conv2 (3x3, pad=1) + ReLU ------------------------------------------
    if use_im2col:
        # planes is a multiple of 128: lane-aligned concat, one K=9*P matmul.
        patches = jnp.concatenate(
            [x1pad_ref[dy:dy + TH, dx:dx + W, :]
             for dy in range(3) for dx in range(3)],
            axis=-1).reshape(TH * W, 9 * P)
        y2 = jnp.dot(patches, w2_ref[...], preferred_element_type=jnp.float32)
    else:
        # small planes: 9 accumulating taps, no lane-boundary concat / big temp.
        y2 = None
        t = 0
        for dy in range(3):
            for dx in range(3):
                xp = x1pad_ref[dy:dy + TH, dx:dx + W, :].reshape(TH * W, P)
                d = jnp.dot(xp, w2_ref[t, :, :],
                            preferred_element_type=jnp.float32)
                y2 = d if y2 is None else y2 + d
                t += 1
    y2 = jnp.maximum(y2, 0.0)

    # ---- conv3 (1x1) + residual add + ReLU (elementwise kept in f32) --------
    res = xc.astype(jnp.float32)                       # Cin == Cout (no downsample)
    y3 = jnp.dot(y2.astype(w3_ref.dtype), w3_ref[...],
                 preferred_element_type=jnp.float32) + res
    o_ref[...] = jnp.maximum(y3, 0.0).reshape(1, TH, W, Cout).astype(o_ref.dtype)


# ---------------- VMEM budgeting ----------------

def _vmem_limit_bytes():
    """Per-generation VMEM limit: ~48 MiB on v7x (64 MiB parts), ~100 MiB on
    128 MiB parts, never below the safe 32 MiB default."""
    try:
        cap = int(pltpu.get_tpu_info().vmem_capacity_bytes)
    except Exception:
        cap = 64 << 20
    return max(32 << 20, min(cap - (16 << 20), 100 << 20))


def _choose_row_block(H, W, Cin, P, Cout, c_item, out_item,
                      use_im2col, budget_bytes):
    """Largest divisor of H whose per-step VMEM working set fits budget_bytes,
    preferring >= 2 row blocks per image (pipeline depth / megacore on v7x)."""
    def step_bytes(th):
        ctr = 2 * th * W * Cin * c_item                        # input rows, dbl-buffered
        halo = 2 * 2 * W * Cin * c_item                        # 2 halo rows, dbl-buffered
        wgt = 2 * (Cin * P + 9 * P * P + P * Cout) * c_item    # weights, counted x2
        pad = (th + 2) * (W + 2) * P * c_item                  # conv1 scratch
        acc = th * W * max(P, Cout) * 4                        # f32 accumulator value
        patches = th * W * 9 * P * c_item if use_im2col else 0 # im2col temp
        out = 2 * th * W * Cout * out_item                     # output block, dbl-buffered
        return ctr + halo + wgt + pad + acc + patches + out
    divisors = [d for d in range(1, H + 1) if H % d == 0]
    fitting = [d for d in divisors if step_bytes(d) <= budget_bytes]
    if not fitting:
        return 1
    multi = [d for d in fitting if d < H and d >= min(8, H)]
    return max(multi) if multi else max(fitting)


# ---------------- wrapper ----------------

def bottleneck_forward(x, w1_oihw, w2_oihw, w3_oihw, *,
                       compute_dtype=jnp.float32, out_dtype=None,
                       row_block=None, x_is_nhwc=False, return_nhwc=False):
    """Fused Bottleneck forward (stride=1, downsample=None).

    Weights in PyTorch OIHW layout.  compute_dtype=jnp.bfloat16 is recommended
    on ALL generations (v5e/v6e/v7x MXUs are bf16-native): halves HBM traffic,
    accumulation stays f32.  out_dtype defaults to compute_dtype.
    """
    if x_is_nhwc:
        N, H, W, Cin = x.shape
        x_nhwc = x.astype(compute_dtype)
    else:
        N, Cin, H, W = x.shape
        # NCHW -> NHWC so channels land on lanes (full-tensor relayout; avoid
        # it by keeping the surrounding model NHWC).
        x_nhwc = jnp.transpose(x, (0, 2, 3, 1)).astype(compute_dtype)

    planes = w1_oihw.shape[0]
    outplanes = w3_oihw.shape[0]
    if outplanes != Cin:
        raise ValueError("downsample=None requires outplanes == inplanes")
    # TODO(synk): stride>1 / explicit downsample module not implemented.

    out_dtype = compute_dtype if out_dtype is None else out_dtype
    c_item = jnp.dtype(compute_dtype).itemsize
    out_item = jnp.dtype(out_dtype).itemsize

    use_im2col = (planes % 128 == 0)

    # Weight layout glue (tiny, done once outside the kernel).
    w1 = jnp.transpose(w1_oihw[:, :, 0, 0], (1, 0)).astype(compute_dtype)   # (Cin, P)
    w2_hwio = jnp.transpose(w2_oihw, (2, 3, 1, 0)).astype(compute_dtype)    # (3,3,P,P)
    if use_im2col:
        w2 = w2_hwio.reshape(9 * planes, planes)                            # lane-dense
        w2_spec = pl.BlockSpec((9 * planes, planes), lambda n, j: (0, 0))
    else:
        w2 = w2_hwio.reshape(9, planes, planes)                             # per-tap
        w2_spec = pl.BlockSpec((9, planes, planes), lambda n, j: (0, 0, 0))
    w3 = jnp.transpose(w3_oihw[:, :, 0, 0], (1, 0)).astype(compute_dtype)   # (P, Cout)

    vmem_limit = _vmem_limit_bytes()
    TH = row_block if row_block is not None else _choose_row_block(
        H, W, Cin, planes, outplanes, c_item, out_item,
        use_im2col, budget_bytes=vmem_limit // 2)
    assert H % TH == 0
    nH = H // TH

    flops = 2 * N * H * W * (Cin * planes + 9 * planes * planes
                             + planes * outplanes)
    bytes_accessed = (int(N * W * Cin * c_item * (H + 2 * (nH - 1)))
                      + int(N * H * W * outplanes * out_item)
                      + int((w1.size + w2.size + w3.size) * c_item))

    out_nhwc = pl.pallas_call(
        functools.partial(_bottleneck_kernel, use_im2col=use_im2col),
        out_shape=jax.ShapeDtypeStruct((N, H, W, outplanes), out_dtype),
        grid=(N, nH),
        in_specs=[
            # streamed center window of this row block
            pl.BlockSpec((1, TH, W, Cin), lambda n, j: (n, j, 0, 0)),
            # single row above / below the block (clamped at image edges;
            # zero-padded inside the kernel when at the edge)
            pl.BlockSpec((1, 1, W, Cin),
                         lambda n, j: (n, jnp.maximum(j * TH - 1, 0), 0, 0)),
            pl.BlockSpec((1, 1, W, Cin),
                         lambda n, j: (n, jnp.minimum(j * TH + TH, H - 1), 0, 0)),
            pl.BlockSpec((Cin, planes), lambda n, j: (0, 0)),
            w2_spec,
            pl.BlockSpec((planes, outplanes), lambda n, j: (0, 0)),
        ],
        out_specs=pl.BlockSpec((1, TH, W, outplanes), lambda n, j: (n, j, 0, 0)),
        scratch_shapes=[pltpu.VMEM((TH + 2, W + 2, planes), compute_dtype)],
        compiler_params=pltpu.CompilerParams(
            # row-block axis carries no state -> shardable across TCs on v7x
            dimension_semantics=("parallel", "parallel"),
            vmem_limit_bytes=vmem_limit),
        cost_estimate=pl.CostEstimate(
            flops=flops, transcendentals=0, bytes_accessed=bytes_accessed),
    )(x_nhwc, x_nhwc, x_nhwc, w1, w2, w3)

    if return_nhwc:
        return out_nhwc
    return jnp.transpose(out_nhwc, (0, 3, 1, 2))          # back to NCHW


# ---------------- pure-JAX reference (verification only) ----------------

def _ref_forward(x_nchw, w1_oihw, w2_oihw, w3_oihw):
    x = jnp.transpose(x_nchw, (0, 2, 3, 1))
    def conv(x, w_oihw, pad):
        w = jnp.transpose(w_oihw, (2, 3, 1, 0))  # HWIO
        return lax.conv_general_dilated(
            x, w, window_strides=(1, 1),
            padding=[(pad, pad), (pad, pad)],
            dimension_numbers=("NHWC", "HWIO", "NHWC"))
    out = jax.nn.relu(conv(x, w1_oihw, 0))
    out = jax.nn.relu(conv(out, w2_oihw, 1))
    out = conv(out, w3_oihw, 0)
    out = jax.nn.relu(out + x)
    return jnp.transpose(out, (0, 3, 1, 2))


if __name__ == "__main__":
    # ---- Test 1: tap path (planes < 128): inplanes=8, planes=4, outplanes=8 --
    N, inplanes, planes, outplanes, H, W = 2, 8, 4, 8, 16, 16
    key = jax.random.PRNGKey(0)
    kx, k1, k2, k3 = jax.random.split(key, 4)
    x = jax.random.normal(kx, (N, inplanes, H, W), dtype=jnp.float32)
    w1 = jax.random.normal(k1, (planes, inplanes, 1, 1), dtype=jnp.float32) * 0.2
    w2 = jax.random.normal(k2, (planes, planes, 3, 3), dtype=jnp.float32) * 0.2
    w3 = jax.random.normal(k3, (outplanes, planes, 1, 1), dtype=jnp.float32) * 0.2

    ref = jax.block_until_ready(_ref_forward(x, w1, w2, w3))

    # f32 path (tight check).  H=16 -> TH=8, grid=(2, 2): both halo branches
    # and the row-block pipelining are exercised.
    out = jax.block_until_ready(bottleneck_forward(x, w1, w2, w3))
    np.testing.assert_allclose(np.asarray(out), np.asarray(ref),
                               rtol=1e-4, atol=1e-4)

    # bf16 path: bf16 HBM/MXU operands + bf16 output, f32 accumulation.
    out_bf16 = jax.block_until_ready(
        bottleneck_forward(x, w1, w2, w3, compute_dtype=jnp.bfloat16))
    np.testing.assert_allclose(np.asarray(out_bf16.astype(jnp.float32)),
                               np.asarray(ref), rtol=1e-1, atol=1e-1)

    # ---- Test 2: im2col path (planes % 128 == 0), f32 ------------------------
    N2, C2, P2, H2, W2 = 1, 256, 128, 16, 16
    kx2, k21, k22, k23 = jax.random.split(jax.random.PRNGKey(1), 4)
    x2 = jax.random.normal(kx2, (N2, C2, H2, W2), dtype=jnp.float32)
    w21 = jax.random.normal(k21, (P2, C2, 1, 1), dtype=jnp.float32) * 0.05
    w22 = jax.random.normal(k22, (P2, P2, 3, 3), dtype=jnp.float32) * 0.05
    w23 = jax.random.normal(k23, (C2, P2, 1, 1), dtype=jnp.float32) * 0.05
    ref2 = jax.block_until_ready(_ref_forward(x2, w21, w22, w23))
    out2 = jax.block_until_ready(bottleneck_forward(x2, w21, w22, w23))
    np.testing.assert_allclose(np.asarray(out2), np.asarray(ref2),
                               rtol=1e-3, atol=1e-3)

    print("KERNEL_OK")
</pallas_src>

<mosaic_0001>
module attributes {stable_mosaic.version = 11 : i64} {
  func.func @_bottleneck_kernel(%arg0: i32, %arg1: i32, %arg2: memref<1x8x16x8xf32, #tpu.memory_space<vmem>>, %arg3: memref<1x1x16x8xf32, #tpu.memory_space<vmem>>, %arg4: memref<1x1x16x8xf32, #tpu.memory_space<vmem>>, %arg5: memref<8x4xf32, #tpu.memory_space<vmem>>, %arg6: memref<9x4x4xf32, #tpu.memory_space<vmem>>, %arg7: memref<4x8xf32, #tpu.memory_space<vmem>>, %arg8: memref<1x8x16x8xf32, #tpu.memory_space<vmem>>, %arg9: memref<10x18x4xf32, #tpu.memory_space<vmem>>) attributes {dimension_semantics = [#tpu.dimension_semantics<parallel>, #tpu.dimension_semantics<parallel>], iteration_bounds = array<i64: 2, 2>, scalar_prefetch = 0 : i64, scratch_operands = 1 : i64, tpu.core_type = #tpu.core_type<tc>, window_params = [{transform_indices = @transform_0, window_bounds = array<i64: 1, 8, 16, 8>}, {transform_indices = @transform_1, window_bounds = array<i64: 1, 1, 16, 8>}, {transform_indices = @transform_2, window_bounds = array<i64: 1, 1, 16, 8>}, {pipeline_mode = #tpu.pipeline_mode<synchronous>, transform_indices = @transform_3, window_bounds = array<i64: 8, 4>}, {pipeline_mode = #tpu.pipeline_mode<synchronous>, transform_indices = @transform_4, window_bounds = array<i64: 9, 4, 4>}, {pipeline_mode = #tpu.pipeline_mode<synchronous>, transform_indices = @transform_5, window_bounds = array<i64: 4, 8>}, {transform_indices = @transform_6, window_bounds = array<i64: 1, 8, 16, 8>}]} {
    %cst = arith.constant 0.000000e+00 : f32
    %0 = vector.broadcast %cst : f32 to vector<10x1x4xf32>
    %c0 = arith.constant 0 : index
    %c0_0 = arith.constant 0 : index
    %c0_1 = arith.constant 0 : index
    %1 = vector.load %arg9[%c0, %c0_0, %c0_1] : memref<10x18x4xf32, #tpu.memory_space<vmem>>, vector<10x1x4xf32>
    tpu.vector_store %arg9[%c0, %c0_0, %c0_1], %0 {strides = array<i32>} : memref<10x18x4xf32, #tpu.memory_space<vmem>>, vector<10x1x4xf32>,
    %c0_2 = arith.constant 0 : index
    %c17 = arith.constant 17 : index
    %c0_3 = arith.constant 0 : index
    %2 = vector.load %arg9[%c0_2, %c17, %c0_3] : memref<10x18x4xf32, #tpu.memory_space<vmem>>, vector<10x1x4xf32>
    tpu.vector_store %arg9[%c0_2, %c17, %c0_3], %0 {strides = array<i32>} : memref<10x18x4xf32, #tpu.memory_space<vmem>>, vector<10x1x4xf32>,
    %c0_4 = arith.constant 0 : index
    %c0_5 = arith.constant 0 : index
    %c0_6 = arith.constant 0 : index
    %c0_7 = arith.constant 0 : index
    %3 = vector.load %arg2[%c0_4, %c0_5, %c0_6, %c0_7] : memref<1x8x16x8xf32, #tpu.memory_space<vmem>>, vector<1x8x16x8xf32>
    %4 = vector.shape_cast %3 : vector<1x8x16x8xf32> to vector<128x8xf32>
    %c0_8 = arith.constant 0 : index
    %c0_9 = arith.constant 0 : index
    %5 = vector.load %arg5[%c0_8, %c0_9] : memref<8x4xf32, #tpu.memory_space<vmem>>, vector<8x4xf32>
    %cst_10 = arith.constant dense<0.000000e+00> : vector<128x4xf32>
    %6 = tpu.matmul %4, %5, %cst_10 {dimension_numbers = #tpu.dot_dimension_numbers<[1], [0], [0], [1], [0, 0, 1, 1], [], []>} : vector<128x8xf32>, vector<8x4xf32>, vector<128x4xf32> -> vector<128x4xf32>
    %cst_11 = arith.constant 0.000000e+00 : f32
    %7 = vector.broadcast %cst_11 : f32 to vector<128x4xf32>
    %8 = arith.maximumf %6, %7 : vector<128x4xf32>
    %9 = vector.shape_cast %8 : vector<128x4xf32> to vector<8x16x4xf32>
    %c1 = arith.constant 1 : index
    %c1_12 = arith.constant 1 : index
    %c0_13 = arith.constant 0 : index
    %10 = vector.load %arg9[%c1, %c1_12, %c0_13] : memref<10x18x4xf32, #tpu.memory_space<vmem>>, vector<8x16x4xf32>
    tpu.vector_store %arg9[%c1, %c1_12, %c0_13], %9 {strides = array<i32>} : memref<10x18x4xf32, #tpu.memory_space<vmem>>, vector<8x16x4xf32>,
    %c0_i32 = arith.constant 0 : i32
    %11 = arith.cmpi eq, %arg1, %c0_i32 : i32
    %12 = arith.extui %11 : i1 to i32
    %c0_i32_14 = arith.constant 0 : i32
    %13 = arith.cmpi ne, %12, %c0_i32_14 : i32
    scf.if %13 {
      %cst_85 = arith.constant 0.000000e+00 : f32
      %85 = vector.broadcast %cst_85 : f32 to vector<1x16x4xf32>
      %c0_86 = arith.constant 0 : index
      %c1_87 = arith.constant 1 : index
      %c0_88 = arith.constant 0 : index
      %86 = vector.load %arg9[%c0_86, %c1_87, %c0_88] : memref<10x18x4xf32, #tpu.memory_space<vmem>>, vector<1x16x4xf32>
      tpu.vector_store %arg9[%c0_86, %c1_87, %c0_88], %85 {strides = array<i32>} : memref<10x18x4xf32, #tpu.memory_space<vmem>>, vector<1x16x4xf32>,
    } else {
    }
    %c0_i32_15 = arith.constant 0 : i32
    %14 = arith.cmpi sgt, %arg1, %c0_i32_15 : i32
    %15 = arith.extui %14 : i1 to i32
    %c0_i32_16 = arith.constant 0 : i32
    %16 = arith.cmpi ne, %15, %c0_i32_16 : i32
    scf.if %16 {
      %c0_85 = arith.constant 0 : index
      %c0_86 = arith.constant 0 : index
      %c0_87 = arith.constant 0 : index
      %c0_88 = arith.constant 0 : index
      %85 = vector.load %arg3[%c0_85, %c0_86, %c0_87, %c0_88] : memref<1x1x16x8xf32, #tpu.memory_space<vmem>>, vector<1x1x16x8xf32>
      %86 = vector.shape_cast %85 : vector<1x1x16x8xf32> to vector<16x8xf32>
      %c0_89 = arith.constant 0 : index
      %c0_90 = arith.constant 0 : index
      %87 = vector.load %arg5[%c0_89, %c0_90] : memref<8x4xf32, #tpu.memory_space<vmem>>, vector<8x4xf32>
      %cst_91 = arith.constant dense<0.000000e+00> : vector<16x4xf32>
      %88 = tpu.matmul %86, %87, %cst_91 {dimension_numbers = #tpu.dot_dimension_numbers<[1], [0], [0], [1], [0, 0, 1, 1], [], []>} : vector<16x8xf32>, vector<8x4xf32>, vector<16x4xf32> -> vector<16x4xf32>
      %cst_92 = arith.constant 0.000000e+00 : f32
      %89 = vector.broadcast %cst_92 : f32 to vector<16x4xf32>
      %90 = arith.maximumf %88, %89 : vector<16x4xf32>
      %91 = vector.shape_cast %90 : vector<16x4xf32> to vector<1x16x4xf32>
      %c0_93 = arith.constant 0 : index
      %c1_94 = arith.constant 1 : index
      %c0_95 = arith.constant 0 : index
      %92 = vector.load %arg9[%c0_93, %c1_94, %c0_95] : memref<10x18x4xf32, #tpu.memory_space<vmem>>, vector<1x16x4xf32>
      tpu.vector_store %arg9[%c0_93, %c1_94, %c0_95], %91 {strides = array<i32>} : memref<10x18x4xf32, #tpu.memory_space<vmem>>, vector<1x16x4xf32>,
    } else {
    }
    %c1_i32 = arith.constant 1 : i32
    %17 = arith.cmpi eq, %arg1, %c1_i32 : i32
    %18 = arith.extui %17 : i1 to i32
    %c0_i32_17 = arith.constant 0 : i32
    %19 = arith.cmpi ne, %18, %c0_i32_17 : i32
    scf.if %19 {
      %cst_85 = arith.constant 0.000000e+00 : f32
      %85 = vector.broadcast %cst_85 : f32 to vector<1x16x4xf32>
      %c9 = arith.constant 9 : index
      %c1_86 = arith.constant 1 : index
      %c0_87 = arith.constant 0 : index
      %86 = vector.load %arg9[%c9, %c1_86, %c0_87] : memref<10x18x4xf32, #tpu.memory_space<vmem>>, vector<1x16x4xf32>
      tpu.vector_store %arg9[%c9, %c1_86, %c0_87], %85 {strides = array<i32>} : memref<10x18x4xf32, #tpu.memory_space<vmem>>, vector<1x16x4xf32>,
    } else {
    }
    %c1_i32_18 = arith.constant 1 : i32
    %20 = arith.cmpi slt, %arg1, %c1_i32_18 : i32
    %21 = arith.extui %20 : i1 to i32
    %c0_i32_19 = arith.constant 0 : i32
    %22 = arith.cmpi ne, %21, %c0_i32_19 : i32
    scf.if %22 {
      %c0_85 = arith.constant 0 : index
      %c0_86 = arith.constant 0 : index
      %c0_87 = arith.constant 0 : index
      %c0_88 = arith.constant 0 : index
      %85 = vector.load %arg4[%c0_85, %c0_86, %c0_87, %c0_88] : memref<1x1x16x8xf32, #tpu.memory_space<vmem>>, vector<1x1x16x8xf32>
      %86 = vector.shape_cast %85 : vector<1x1x16x8xf32> to vector<16x8xf32>
      %c0_89 = arith.constant 0 : index
      %c0_90 = arith.constant 0 : index
      %87 = vector.load %arg5[%c0_89, %c0_90] : memref<8x4xf32, #tpu.memory_space<vmem>>, vector<8x4xf32>
      %cst_91 = arith.constant dense<0.000000e+00> : vector<16x4xf32>
      %88 = tpu.matmul %86, %87, %cst_91 {dimension_numbers = #tpu.dot_dimension_numbers<[1], [0], [0], [1], [0, 0, 1, 1], [], []>} : vector<16x8xf32>, vector<8x4xf32>, vector<16x4xf32> -> vector<16x4xf32>
      %cst_92 = arith.constant 0.000000e+00 : f32
      %89 = vector.broadcast %cst_92 : f32 to vector<16x4xf32>
      %90 = arith.maximumf %88, %89 : vector<16x4xf32>
      %91 = vector.shape_cast %90 : vector<16x4xf32> to vector<1x16x4xf32>
      %c9 = arith.constant 9 : index
      %c1_93 = arith.constant 1 : index
      %c0_94 = arith.constant 0 : index
      %92 = vector.load %arg9[%c9, %c1_93, %c0_94] : memref<10x18x4xf32, #tpu.memory_space<vmem>>, vector<1x16x4xf32>
      tpu.vector_store %arg9[%c9, %c1_93, %c0_94], %91 {strides = array<i32>} : memref<10x18x4xf32, #tpu.memory_space<vmem>>, vector<1x16x4xf32>,
    } else {
    }
    %c0_20 = arith.constant 0 : index
    %c0_21 = arith.constant 0 : index
    %c0_22 = arith.constant 0 : index
    %23 = vector.load %arg9[%c0_20, %c0_21, %c0_22] : memref<10x18x4xf32, #tpu.memory_space<vmem>>, vector<8x16x4xf32>
    %24 = vector.shape_cast %23 : vector<8x16x4xf32> to vector<128x4xf32>
    %c0_23 = arith.constant 0 : index
    %c0_24 = arith.constant 0 : index
    %c0_25 = arith.constant 0 : index
    %25 = vector.load %arg6[%c0_23, %c0_24, %c0_25] : memref<9x4x4xf32, #tpu.memory_space<vmem>>, vector<1x4x4xf32>
    %26 = vector.shape_cast %25 : vector<1x4x4xf32> to vector<4x4xf32>
    %cst_26 = arith.constant dense<0.000000e+00> : vector<128x4xf32>
    %27 = tpu.matmul %24, %26, %cst_26 {dimension_numbers = #tpu.dot_dimension_numbers<[1], [0], [0], [1], [0, 0, 1, 1], [], []>} : vector<128x4xf32>, vector<4x4xf32>, vector<128x4xf32> -> vector<128x4xf32>
    %c0_27 = arith.constant 0 : index
    %c1_28 = arith.constant 1 : index
    %c0_29 = arith.constant 0 : index
    %28 = vector.load %arg9[%c0_27, %c1_28, %c0_29] : memref<10x18x4xf32, #tpu.memory_space<vmem>>, vector<8x16x4xf32>
    %29 = vector.shape_cast %28 : vector<8x16x4xf32> to vector<128x4xf32>
    %c1_30 = arith.constant 1 : index
    %c0_31 = arith.constant 0 : index
    %c0_32 = arith.constant 0 : index
    %30 = vector.load %arg6[%c1_30, %c0_31, %c0_32] : memref<9x4x4xf32, #tpu.memory_space<vmem>>, vector<1x4x4xf32>
    %31 = vector.shape_cast %30 : vector<1x4x4xf32> to vector<4x4xf32>
    %cst_33 = arith.constant dense<0.000000e+00> : vector<128x4xf32>
    %32 = tpu.matmul %29, %31, %cst_33 {dimension_numbers = #tpu.dot_dimension_numbers<[1], [0], [0], [1], [0, 0, 1, 1], [], []>} : vector<128x4xf32>, vector<4x4xf32>, vector<128x4xf32> -> vector<128x4xf32>
    %33 = arith.addf %27, %32 : vector<128x4xf32>
    %c0_34 = arith.constant 0 : index
    %c2 = arith.constant 2 : index
    %c0_35 = arith.constant 0 : index
    %34 = vector.load %arg9[%c0_34, %c2, %c0_35] : memref<10x18x4xf32, #tpu.memory_space<vmem>>, vector<8x16x4xf32>
    %35 = vector.shape_cast %34 : vector<8x16x4xf32> to vector<128x4xf32>
    %c2_36 = arith.constant 2 : index
    %c0_37 = arith.constant 0 : index
    %c0_38 = arith.constant 0 : index
    %36 = vector.load %arg6[%c2_36, %c0_37, %c0_38] : memref<9x4x4xf32, #tpu.memory_space<vmem>>, vector<1x4x4xf32>
    %37 = vector.shape_cast %36 : vector<1x4x4xf32> to vector<4x4xf32>
    %cst_39 = arith.constant dense<0.000000e+00> : vector<128x4xf32>
    %38 = tpu.matmul %35, %37, %cst_39 {dimension_numbers = #tpu.dot_dimension_numbers<[1], [0], [0], [1], [0, 0, 1, 1], [], []>} : vector<128x4xf32>, vector<4x4xf32>, vector<128x4xf32> -> vector<128x4xf32>
    %39 = arith.addf %33, %38 : vector<128x4xf32>
    %c1_40 = arith.constant 1 : index
    %c0_41 = arith.constant 0 : index
    %c0_42 = arith.constant 0 : index
    %40 = vector.load %arg9[%c1_40, %c0_41, %c0_42] : memref<10x18x4xf32, #tpu.memory_space<vmem>>, vector<8x16x4xf32>
    %41 = vector.shape_cast %40 : vector<8x16x4xf32> to vector<128x4xf32>
    %c3 = arith.constant 3 : index
    %c0_43 = arith.constant 0 : index
    %c0_44 = arith.constant 0 : index
    %42 = vector.load %arg6[%c3, %c0_43, %c0_44] : memref<9x4x4xf32, #tpu.memory_space<vmem>>, vector<1x4x4xf32>
    %43 = vector.shape_cast %42 : vector<1x4x4xf32> to vector<4x4xf32>
    %cst_45 = arith.constant dense<0.000000e+00> : vector<128x4xf32>
    %44 = tpu.matmul %41, %43, %cst_45 {dimension_numbers = #tpu.dot_dimension_numbers<[1], [0], [0], [1], [0, 0, 1, 1], [], []>} : vector<128x4xf32>, vector<4x4xf32>, vector<128x4xf32> -> vector<128x4xf32>
    %45 = arith.addf %39, %44 : vector<128x4xf32>
    %c1_46 = arith.constant 1 : index
    %c1_47 = arith.constant 1 : index
    %c0_48 = arith.constant 0 : index
    %46 = vector.load %arg9[%c1_46, %c1_47, %c0_48] : memref<10x18x4xf32, #tpu.memory_space<vmem>>, vector<8x16x4xf32>
    %47 = vector.shape_cast %46 : vector<8x16x4xf32> to vector<128x4xf32>
    %c4 = arith.constant 4 : index
    %c0_49 = arith.constant 0 : index
    %c0_50 = arith.constant 0 : index
    %48 = vector.load %arg6[%c4, %c0_49, %c0_50] : memref<9x4x4xf32, #tpu.memory_space<vmem>>, vector<1x4x4xf32>
    %49 = vector.shape_cast %48 : vector<1x4x4xf32> to vector<4x4xf32>
    %cst_51 = arith.constant dense<0.000000e+00> : vector<128x4xf32>
    %50 = tpu.matmul %47, %49, %cst_51 {dimension_numbers = #tpu.dot_dimension_numbers<[1], [0], [0], [1], [0, 0, 1, 1], [], []>} : vector<128x4xf32>, vector<4x4xf32>, vector<128x4xf32> -> vector<128x4xf32>
    %51 = arith.addf %45, %50 : vector<128x4xf32>
    %c1_52 = arith.constant 1 : index
    %c2_53 = arith.constant 2 : index
    %c0_54 = arith.constant 0 : index
    %52 = vector.load %arg9[%c1_52, %c2_53, %c0_54] : memref<10x18x4xf32, #tpu.memory_space<vmem>>, vector<8x16x4xf32>
    %53 = vector.shape_cast %52 : vector<8x16x4xf32> to vector<128x4xf32>
    %c5 = arith.constant 5 : index
    %c0_55 = arith.constant 0 : index
    %c0_56 = arith.constant 0 : index
    %54 = vector.load %arg6[%c5, %c0_55, %c0_56] : memref<9x4x4xf32, #tpu.memory_space<vmem>>, vector<1x4x4xf32>
    %55 = vector.shape_cast %54 : vector<1x4x4xf32> to vector<4x4xf32>
    %cst_57 = arith.constant dense<0.000000e+00> : vector<128x4xf32>
    %56 = tpu.matmul %53, %55, %cst_57 {dimension_numbers = #tpu.dot_dimension_numbers<[1], [0], [0], [1], [0, 0, 1, 1], [], []>} : vector<128x4xf32>, vector<4x4xf32>, vector<128x4xf32> -> vector<128x4xf32>
    %57 = arith.addf %51, %56 : vector<128x4xf32>
    %c2_58 = arith.constant 2 : index
    %c0_59 = arith.constant 0 : index
    %c0_60 = arith.constant 0 : index
    %58 = vector.load %arg9[%c2_58, %c0_59, %c0_60] : memref<10x18x4xf32, #tpu.memory_space<vmem>>, vector<8x16x4xf32>
    %59 = vector.shape_cast %58 : vector<8x16x4xf32> to vector<128x4xf32>
    %c6 = arith.constant 6 : index
    %c0_61 = arith.constant 0 : index
    %c0_62 = arith.constant 0 : index
    %60 = vector.load %arg6[%c6, %c0_61, %c0_62] : memref<9x4x4xf32, #tpu.memory_space<vmem>>, vector<1x4x4xf32>
    %61 = vector.shape_cast %60 : vector<1x4x4xf32> to vector<4x4xf32>
    %cst_63 = arith.constant dense<0.000000e+00> : vector<128x4xf32>
    %62 = tpu.matmul %59, %61, %cst_63 {dimension_numbers = #tpu.dot_dimension_numbers<[1], [0], [0], [1], [0, 0, 1, 1], [], []>} : vector<128x4xf32>, vector<4x4xf32>, vector<128x4xf32> -> vector<128x4xf32>
    %63 = arith.addf %57, %62 : vector<128x4xf32>
    %c2_64 = arith.constant 2 : index
    %c1_65 = arith.constant 1 : index
    %c0_66 = arith.constant 0 : index
    %64 = vector.load %arg9[%c2_64, %c1_65, %c0_66] : memref<10x18x4xf32, #tpu.memory_space<vmem>>, vector<8x16x4xf32>
    %65 = vector.shape_cast %64 : vector<8x16x4xf32> to vector<128x4xf32>
    %c7 = arith.constant 7 : index
    %c0_67 = arith.constant 0 : index
    %c0_68 = arith.constant 0 : index
    %66 = vector.load %arg6[%c7, %c0_67, %c0_68] : memref<9x4x4xf32, #tpu.memory_space<vmem>>, vector<1x4x4xf32>
    %67 = vector.shape_cast %66 : vector<1x4x4xf32> to vector<4x4xf32>
    %cst_69 = arith.constant dense<0.000000e+00> : vector<128x4xf32>
    %68 = tpu.matmul %65, %67, %cst_69 {dimension_numbers = #tpu.dot_dimension_numbers<[1], [0], [0], [1], [0, 0, 1, 1], [], []>} : vector<128x4xf32>, vector<4x4xf32>, vector<128x4xf32> -> vector<128x4xf32>
    %69 = arith.addf %63, %68 : vector<128x4xf32>
    %c2_70 = arith.constant 2 : index
    %c2_71 = arith.constant 2 : index
    %c0_72 = arith.constant 0 : index
    %70 = vector.load %arg9[%c2_70, %c2_71, %c0_72] : memref<10x18x4xf32, #tpu.memory_space<vmem>>, vector<8x16x4xf32>
    %71 = vector.shape_cast %70 : vector<8x16x4xf32> to vector<128x4xf32>
    %c8 = arith.constant 8 : index
    %c0_73 = arith.constant 0 : index
    %c0_74 = arith.constant 0 : index
    %72 = vector.load %arg6[%c8, %c0_73, %c0_74] : memref<9x4x4xf32, #tpu.memory_space<vmem>>, vector<1x4x4xf32>
    %73 = vector.shape_cast %72 : vector<1x4x4xf32> to vector<4x4xf32>
    %cst_75 = arith.constant dense<0.000000e+00> : vector<128x4xf32>
    %74 = tpu.matmul %71, %73, %cst_75 {dimension_numbers = #tpu.dot_dimension_numbers<[1], [0], [0], [1], [0, 0, 1, 1], [], []>} : vector<128x4xf32>, vector<4x4xf32>, vector<128x4xf32> -> vector<128x4xf32>
    %75 = arith.addf %69, %74 : vector<128x4xf32>
    %cst_76 = arith.constant 0.000000e+00 : f32
    %76 = vector.broadcast %cst_76 : f32 to vector<128x4xf32>
    %77 = arith.maximumf %75, %76 : vector<128x4xf32>
    %c0_77 = arith.constant 0 : index
    %c0_78 = arith.constant 0 : index
    %78 = vector.load %arg7[%c0_77, %c0_78] : memref<4x8xf32, #tpu.memory_space<vmem>>, vector<4x8xf32>
    %cst_79 = arith.constant dense<0.000000e+00> : vector<128x8xf32>
    %79 = tpu.matmul %77, %78, %cst_79 {dimension_numbers = #tpu.dot_dimension_numbers<[1], [0], [0], [1], [0, 0, 1, 1], [], []>} : vector<128x4xf32>, vector<4x8xf32>, vector<128x8xf32> -> vector<128x8xf32>
    %80 = arith.addf %79, %4 : vector<128x8xf32>
    %cst_80 = arith.constant 0.000000e+00 : f32
    %81 = vector.broadcast %cst_80 : f32 to vector<128x8xf32>
    %82 = arith.maximumf %80, %81 : vector<128x8xf32>
    %83 = vector.shape_cast %82 : vector<128x8xf32> to vector<1x8x16x8xf32>
    %c0_81 = arith.constant 0 : index
    %c0_82 = arith.constant 0 : index
    %c0_83 = arith.constant 0 : index
    %c0_84 = arith.constant 0 : index
    %84 = vector.load %arg8[%c0_81, %c0_82, %c0_83, %c0_84] : memref<1x8x16x8xf32, #tpu.memory_space<vmem>>, vector<1x8x16x8xf32>
    tpu.vector_store %arg8[%c0_81, %c0_82, %c0_83, %c0_84], %83 {strides = array<i32>} : memref<1x8x16x8xf32, #tpu.memory_space<vmem>>, vector<1x8x16x8xf32>,
    return
  }
  func.func @transform_0(%arg0: i32, %arg1: i32) -> (i32, i32, i32, i32) {
    %c0_i32 = arith.constant 0 : i32
    %c0_i32_0 = arith.constant 0 : i32
    %c0_i32_1 = arith.constant 0 : i32
    return %arg0, %arg1, %c0_i32, %c0_i32_0 : i32, i32, i32, i32
  }
  func.func @transform_1(%arg0: i32, %arg1: i32) -> (i32, i32, i32, i32) {
    %c8_i32 = arith.constant 8 : i32
    %0 = arith.muli %arg1, %c8_i32 : i32
    %c1_i32 = arith.constant 1 : i32
    %1 = arith.subi %0, %c1_i32 : i32
    %c0_i32 = arith.constant 0 : i32
    %2 = arith.maxsi %1, %c0_i32 : i32
    %c0_i32_0 = arith.constant 0 : i32
    %c0_i32_1 = arith.constant 0 : i32
    %c0_i32_2 = arith.constant 0 : i32
    return %arg0, %2, %c0_i32_0, %c0_i32_1 : i32, i32, i32, i32
  }
  func.func @transform_2(%arg0: i32, %arg1: i32) -> (i32, i32, i32, i32) {
    %c8_i32 = arith.constant 8 : i32
    %0 = arith.muli %arg1, %c8_i32 : i32
    %c8_i32_0 = arith.constant 8 : i32
    %1 = arith.addi %0, %c8_i32_0 : i32
    %c15_i32 = arith.constant 15 : i32
    %2 = arith.minsi %1, %c15_i32 : i32
    %c0_i32 = arith.constant 0 : i32
    %c0_i32_1 = arith.constant 0 : i32
    %c0_i32_2 = arith.constant 0 : i32
    return %arg0, %2, %c0_i32, %c0_i32_1 : i32, i32, i32, i32
  }
  func.func @transform_3(%arg0: i32, %arg1: i32) -> (i32, i32) {
    %c0_i32 = arith.constant 0 : i32
    %c0_i32_0 = arith.constant 0 : i32
    %c0_i32_1 = arith.constant 0 : i32
    return %c0_i32, %c0_i32_0 : i32, i32
  }
  func.func @transform_4(%arg0: i32, %arg1: i32) -> (i32, i32, i32) {
    %c0_i32 = arith.constant 0 : i32
    %c0_i32_0 = arith.constant 0 : i32
    %c0_i32_1 = arith.constant 0 : i32
    %c0_i32_2 = arith.constant 0 : i32
    return %c0_i32, %c0_i32_0, %c0_i32_1 : i32, i32, i32
  }
  func.func @transform_5(%arg0: i32, %arg1: i32) -> (i32, i32) {
    %c0_i32 = arith.constant 0 : i32
    %c0_i32_0 = arith.constant 0 : i32
    %c0_i32_1 = arith.constant 0 : i32
    return %c0_i32, %c0_i32_0 : i32, i32
  }
  func.func @transform_6(%arg0: i32, %arg1: i32) -> (i32, i32, i32, i32) {
    %c0_i32 = arith.constant 0 : i32
    %c0_i32_0 = arith.constant 0 : i32
    %c0_i32_1 = arith.constant 0 : i32
    return %arg0, %arg1, %c0_i32, %c0_i32_0 : i32, i32, i32, i32
  }
}

</mosaic_0001>

<bundles_post_ra>
// kernel: tpu_custom_call.1
= control target key start
LH: loop header
LB: loop body
LE: loop exit
PB: predicated region body
PF: predicated region fallthrough
CT: control target
= control target key end

     0   :  { %s2695_s21 = smov 0   ;;  %s2697_s22 = smov 0   ;;  %s3506_s0 = inlined_call_operand.vmem [shape: f32[2,16,16,8], index: 0, kind: input, shape index: {}]   ;;  %s3507_s1 = inlined_call_operand.vmem [shape: f32[2,16,16,8], index: 1, kind: input, shape index: {}]   ;;  %s3508_s2 = inlined_call_operand.vmem [shape: f32[2,16,16,8], index: 2, kind: input, shape index: {}]   ;;  %s3509_s3 = inlined_call_operand.vmem [shape: f32[8,4], index: 3, kind: input, shape index: {}]   ;;  %s3510_s4 = inlined_call_operand.vmem [shape: f32[9,4,4], index: 4, kind: input, shape index: {}]   ;;  %s3511_s5 = inlined_call_operand.vmem [shape: f32[4,8], index: 5, kind: input, shape index: {}]   ;;  %s3512_s6 = inlined_call_operand.vmem [shape: f32[2,16,16,8], index: 6, kind: output, shape index: {}]  }
   0x1   :  { %s2699_s23 = smov 0   ;;  %s2701_s24 = smov 0  }
   0x2   :  { %s2703_s25 = smov 0  }
   0x3 LB: > { %s25_s26 = sadd.s32 1, %s2647_s23  ;;  %s28_s27 = sadd.s32 1, %s2651_s24  ;;  %s2655_s25 = sphi %s2703_s25, %s16_s25   ;;  %s2651_s24 = sphi %s2701_s24, %s3580_s24   ;;  %s2647_s23 = sphi %s2699_s23, %s3579_s23   ;;  %s2643_s22 = sphi %s2697_s22, %s3578_s22   ;;  %s2639_s21 = sphi %s2695_s21, %s3577_s21  }
   0x4   : > { %p26_p0 = scmp.ge.s32.totalorder %s25_s26, 2  ;;  %p2335_p1 = scmp.ge.s32.totalorder %s2655_s25, 1 }
   0x5   : > { %p298_p2 = scmp.lt.s32.totalorder %s2655_s25, 5 }
   0x6   : > { %s3582_s26 = smov (%p26_p0, %s25_s26), 0  ;;  %s3584_s27 = smov (!%p26_p0, %s28_s27), %s2651_s24 }
   0x7   : > { %p299_p3 = pnand %p2335_p1, %p298_p2  ;;  %p30_p4 = scmp.ge.s32.totalorder %s3584_s27, 2 }
   0x9   : > { %s3586_s27 = smov (%p30_p4, %s3584_s27), 0  ;;  %302 = sbr.rel (%p299_p3) target bundleno = 1060 (0x424), region = 44 }
   0xe   : > { %v457_v0 = vld [vmem:[%s3509_s3] sm:$0xff]  ;;  %s2731_s30 = sshll.u32 %s2639_s21, 3  ;;  %p365_p5 = scmp.lt.s32.totalorder %s2643_s22, 1  ;;  %vm420_vm0 = vcmask 24576   ;;  %v2657_v1 = vmov 0.0   ;;  %vm458_vm1 = vcmask 64512  }
   0xf   : > { %2568 = vmatpush.msra.mxu2 %v457_v0  ;;  %2569 = vmatpush.msra.mxu3 %v457_v0  ;;  %p367_p6 = scmp.lt.s32.totalorder %s2731_s30, 15  ;;  %s2735_s7 = sadd.s32 4294967295, %s2731_s30  ;;  %421 = vst.msk [vmem:[#allocation2] sm:$0x1] %vm420_vm0, %v2657_v1  ;;  %vm589_vm2 = vcmask 31744  }
  0x10   : > { %s3588_s22 = smov (!%p365_p5, %s2643_s22), 1  ;;  %422 = vst.msk [vmem:[#allocation2 + $0x18] sm:$0x1] %vm420_vm0, %v2657_v1  ;;  %522 = vmatpush.msra.mxu0 %v457_v0  ;;  %2567 = vmatpush.msra.mxu1 %v457_v0  ;;  %p377_p7 = scmp.gt.s32.totalorder %s2735_s7, 0 }
  0x11   : > { %s368_s8 = scalar_select %p367_p6, %s2731_s30, 15  ;;  %423 = vst.msk [vmem:[#allocation2 + $0x30] sm:$0x1] %vm420_vm0, %v2657_v1 }
  0x12   : > { %s2744_s9 = sshll.u32 %s3588_s22, 5  ;;  %424 = vst.msk [vmem:[#allocation2 + $0x48] sm:$0x1] %vm420_vm0, %v2657_v1  ;;  %p2342_p8 = scmp.lt.s32.totalorder %s2735_s7, 15 }
  0x13   : > { %s2337_s10 = sshll.u32 %s368_s8, 1  ;;  %425 = vst.msk [vmem:[#allocation2 + $0x60] sm:$0x1] %vm420_vm0, %v2657_v1  ;;  %s393_s12 = sadd.s32 8, %s2731_s30 }
  0x14   : > { %s371_s11 = sadd.s32 %s2744_s9, %s2337_s10  ;;  %426 = vst.msk [vmem:[#allocation2 + $0x78] sm:$0x1] %vm420_vm0, %v2657_v1  ;;  %p2756_p9 = scmp.lt.s32.totalorder %s393_s12, 15 }
  0x15   : > { %s2339_s13 = sshll.u32 %s371_s11, 3  ;;  %427 = vst.msk [vmem:[#allocation2 + $0x90] sm:$0x1] %vm420_vm0, %v2657_v1  ;;  %p2377_p10 = scmp.ne.s32.totalorder %s2639_s21, 0 }
  0x16   : > { %s2765_s17 = scalar_lea.vmem %s3506_s0, %s2339_s13  ;;  %s2770_s20 = scalar_lea.vmem %s3512_s6, %s2339_s13  ;;  %428 = vst.msk [vmem:[#allocation2 + $0xa8] sm:$0x1] %vm420_vm0, %v2657_v1 }
  0x17   : > { %s378_s22 = scalar_select %p377_p7, %s2735_s7, 0  ;;  %v2778_v2 = vld [vmem:[%s2765_s17 + $0x40] sm:$0xff]  ;;  %429 = vst.msk [vmem:[#allocation2 + $0xc0] sm:$0x1] %vm420_vm0, %v2657_v1  ;;  %v2820_v6 = vld [vmem:[%s2765_s17 + $0x48] sm:$0xff]  ;;  %v2860_v10 = vld [vmem:[%s2765_s17 + $0x50] sm:$0xff] }
  0x18   : > { %3533 = vst [vmem:[#allocation3_spill] sm:$0xff] %v2778_v2  ;;  %v2781_v3 = vld [vmem:[%s2765_s17 + $0x60] sm:$0xff]  ;;  %s3590_s12 = smov (!%p2756_p9, %s393_s12), 15  ;;  %2369 = vmatmul.msk.f32.vlgmr.msra.gmra.mxu2 %vm458_vm1, %v2778_v2  ;;  %v2823_v7 = vld [vmem:[%s2765_s17 + $0x68] sm:$0xff]  ;;  %v2863_v11 = vld [vmem:[%s2765_s17 + $0x70] sm:$0xff] }
  0x19   : > { %3534 = vst [vmem:[#allocation4_spill] sm:$0xff] %v2781_v3  ;;  %v2786_v4 = vld [vmem:[%s2765_s17] sm:$0xff]  ;;  %2373 = vmatmul.msk.f32.vlgmr.msra.gmra.mxu3 %vm458_vm1, %v2781_v3  ;;  %s3592_s22 = smov (!%p2342_p8, %s378_s22), 15  ;;  %s3594_s12 = smov (!%p2756_p9, %s3590_s12), 15  ;;  %v2833_v8 = vld [vmem:[%s2765_s17 + $0x8] sm:$0xff]  ;;  %v2866_v12 = vld [vmem:[%s2765_s17 + $0x10] sm:$0xff] }
  0x1a   : > { %3535 = vst [vmem:[#allocation5_spill] sm:$0xff] %v2786_v4  ;;  %v2797_v5 = vld [vmem:[%s2765_s17 + $0x20] sm:$0xff]  ;;  %2361 = vmatmul.msk.f32.vlgmr.msra.gmra.mxu0 %vm458_vm1, %v2786_v4  ;;  %s2347_s28 = sshll.u32 %s3592_s22, 1  ;;  %s2354_s30 = sshll.u32 %s3594_s12, 1  ;;  %v2836_v9 = vld [vmem:[%s2765_s17 + $0x28] sm:$0xff]  ;;  %v2869_v13 = vld [vmem:[%s2765_s17 + $0x30] sm:$0xff] }
  0x1b   : > { %430 = vst.msk [vmem:[#allocation2 + $0xd8] sm:$0x1] %vm420_vm0, %v2657_v1  ;;  %2365 = vmatmul.msk.f32.vlgmr.msra.gmra.mxu1 %vm458_vm1, %v2797_v5  ;;  %s385_s29 = sadd.s32 %s2347_s28, %s2744_s9  ;;  %s402_s8 = sadd.s32 %s2354_s30, %s2744_s9  ;;  %v2880_v14 = vld [vmem:[%s2765_s17 + $0x58] sm:$0xff] }
  0x1c   : > { %3536 = vst [vmem:[#allocation6_spill] sm:$0xff] %v2797_v5  ;;  %s2349_s7 = sshll.u32 %s385_s29, 3  ;;  %s2356_s12 = sshll.u32 %s402_s8, 3  ;;  %v2883_v15 = vld [vmem:[%s2765_s17 + $0x78] sm:$0xff] }
  0x1d   : > { %431 = vst.msk [vmem:[#allocation2 + $0x11] sm:$0x1] %vm420_vm0, %v2657_v1  ;;  %s2828_s13 = scalar_lea.vmem %s3507_s1, %s2349_s7  ;;  %s2841_s15 = scalar_lea.vmem %s3508_s2, %s2356_s12  ;;  %v2886_v16 = vld [vmem:[%s2765_s17 + $0x18] sm:$0xff] }
  0x1e   : > { %432 = vst.msk [vmem:[#allocation2 + $0x29] sm:$0x1] %vm420_vm0, %v2657_v1  ;;  %v2889_v17 = vld [vmem:[%s2765_s17 + $0x38] sm:$0xff] }
  0x1f   : > { %433 = vst.msk [vmem:[#allocation2 + $0x41] sm:$0x1] %vm420_vm0, %v2657_v1 }
  0x20   : > { %434 = vst.msk [vmem:[#allocation2 + $0x59] sm:$0x1] %vm420_vm0, %v2657_v1  ;;  %2370 = vmatmul.msk.f32.gmra.mxu2 %vm458_vm1, %v2820_v6 }
  0x21   : > { %435 = vst.msk [vmem:[#allocation2 + $0x71] sm:$0x1] %vm420_vm0, %v2657_v1  ;;  %2374 = vmatmul.msk.f32.gmra.mxu3 %vm458_vm1, %v2823_v7 }
  0x22   : > { %3537 = vst [vmem:[#allocation7_spill] sm:$0xff] %v2820_v6  ;;  %2362 = vmatmul.msk.f32.gmra.mxu0 %vm458_vm1, %v2833_v8 }
  0x23   : > { %3538 = vst [vmem:[#allocation8_spill] sm:$0xff] %v2823_v7  ;;  %2366 = vmatmul.msk.f32.gmra.mxu1 %vm458_vm1, %v2836_v9 }
  0x24   : > { %436 = vst.msk [vmem:[#allocation2 + $0x89] sm:$0x1] %vm420_vm0, %v2657_v1 }
  0x25   : > { %3539 = vst [vmem:[#allocation9_spill] sm:$0xff] %v2833_v8 }
  0x26   : > { %3540 = vst [vmem:[#allocation10_spill] sm:$0xff] %v2836_v9 }
  0x27   : > { %437 = vst.msk [vmem:[#allocation2 + $0xa1] sm:$0x1] %vm420_vm0, %v2657_v1 }
  0x28   : > { %438 = vst.msk [vmem:[#allocation2 + $0xb9] sm:$0x1] %vm420_vm0, %v2657_v1  ;;  %2371 = vmatmul.msk.f32.gmra.mxu2 %vm458_vm1, %v2860_v10 }
  0x29   : > { %439 = vst.msk [vmem:[#allocation2 + $0xd1] sm:$0x1] %vm420_vm0, %v2657_v1  ;;  %2375 = vmatmul.msk.f32.gmra.mxu3 %vm458_vm1, %v2863_v11 }
  0x2a   : > { %440 = vst.msk [vmem:[#allocation2 + $0xe9] sm:$0x1] %vm420_vm0, %v2657_v1  ;;  %2363 = vmatmul.msk.f32.gmra.mxu0 %vm458_vm1, %v2866_v12 }
  0x2b   : > { %3541 = vst [vmem:[#allocation11_spill] sm:$0xff] %v2860_v10  ;;  %2367 = vmatmul.msk.f32.gmra.mxu1 %vm458_vm1, %v2869_v13 }
  0x2c   : > { %3542 = vst [vmem:[#allocation12_spill] sm:$0xff] %v2863_v11 }
  0x2d   : > { %3543 = vst [vmem:[#allocation13_spill] sm:$0xff] %v2866_v12 }
  0x2e   : > { %3544 = vst [vmem:[#allocation14_spill] sm:$0xff] %v2869_v13 }
  0x2f   : > { %3545 = vst [vmem:[#allocation15_spill] sm:$0xff] %v2880_v14 }
  0x30   : > { %3546 = vst [vmem:[#allocation16_spill] sm:$0xff] %v2883_v15  ;;  %2372 = vmatmul.msk.f32.gmra.mxu2 %vm458_vm1, %v2880_v14 }
  0x31   : > { %3547 = vst [vmem:[#allocation17_spill] sm:$0xff] %v2886_v16  ;;  %2376 = vmatmul.msk.f32.gmra.mxu3 %vm458_vm1, %v2883_v15 }
  0x32   : > { %3548 = vst [vmem:[#allocation18_spill] sm:$0xff] %v2889_v17  ;;  %2364 = vmatmul.msk.f32.gmra.mxu0 %vm458_vm1, %v2886_v16 }
  0x33   : > { %2368 = vmatmul.msk.f32.gmra.mxu1 %vm458_vm1, %v2889_v17 }
  0x97   : > { %v524_v18 = vpop.f32.mrf.mxu0 }
  0x98   : > { %v536_v19 = vpop.f32.mrf.mxu1  ;;  %v572_v20 = vmax.f32 %v524_v18, 0.0 }
  0x99   : > { %v576_v21 = vmax.f32 %v536_v19, 0.0 }
  0x9a   : > { %590 = vst.msk [vmem:[#allocation2 + $0x19] sm:$0xff] %vm589_vm2, %v572_v20 }
  0x9b   : > { %594 = vst.msk [vmem:[#allocation2 + $0x49] sm:$0xff] %vm589_vm2, %v576_v21  ;;  %v548_v22 = vpop.f32.mrf.mxu2 }
  0x9c   : > { %v560_v23 = vpop.f32.mrf.mxu3  ;;  %v580_v24 = vmax.f32 %v548_v22, 0.0 }
  0x9d   : > { %v584_v25 = vmax.f32 %v560_v23, 0.0 }
  0x9e   : > { %598 = vst.msk [vmem:[#allocation2 + $0x79] sm:$0xff] %vm589_vm2, %v580_v24 }
  0x9f   : > { %v527_v26 = vpop.f32.mrf.mxu0  ;;  %602 = vst.msk [vmem:[#allocation2 + $0xa9] sm:$0xff] %vm589_vm2, %v584_v25 }
  0xa0   : > { %v539_v27 = vpop.f32.mrf.mxu1  ;;  %v573_v28 = vmax.f32 %v527_v26, 0.0 }
  0xa1   : > { %v577_v29 = vmax.f32 %v539_v27, 0.0 }
  0xa2   : > { %591 = vst.msk [vmem:[#allocation2 + $0x21] sm:$0xff] %vm589_vm2, %v573_v28 }
  0xa3   : > { %595 = vst.msk [vmem:[#allocation2 + $0x51] sm:$0xff] %vm589_vm2, %v577_v29  ;;  %v551_v30 = vpop.f32.mrf.mxu2 }
  0xa4   : > { %v563_v31 = vpop.f32.mrf.mxu3  ;;  %v581_v32 = vmax.f32 %v551_v30, 0.0 }
  0xa5   : > { %v585_v33 = vmax.f32 %v563_v31, 0.0 }
  0xa6   : > { %599 = vst.msk [vmem:[#allocation2 + $0x81] sm:$0xff] %vm589_vm2, %v581_v32 }
  0xa7   : > { %v530_v34 = vpop.f32.mrf.mxu0  ;;  %603 = vst.msk [vmem:[#allocation2 + $0xb1] sm:$0xff] %vm589_vm2, %v585_v33 }
  0xa8   : > { %v542_v35 = vpop.f32.mrf.mxu1  ;;  %v574_v36 = vmax.f32 %v530_v34, 0.0 }
  0xa9   : > { %v578_v37 = vmax.f32 %v542_v35, 0.0 }
  0xaa   : > { %592 = vst.msk [vmem:[#allocation2 + $0x31] sm:$0xff] %vm589_vm2, %v574_v36 }
  0xab   : > { %596 = vst.msk [vmem:[#allocation2 + $0x61] sm:$0xff] %vm589_vm2, %v578_v37  ;;  %v554_v38 = vpop.f32.mrf.mxu2 }
  0xac   : > { %v566_v39 = vpop.f32.mrf.mxu3  ;;  %v582_v40 = vmax.f32 %v554_v38, 0.0 }
  0xad   : > { %v586_v41 = vmax.f32 %v566_v39, 0.0 }
  0xae   : > { %600 = vst.msk [vmem:[#allocation2 + $0x91] sm:$0xff] %vm589_vm2, %v582_v40 }
  0xaf   : > { %v533_v42 = vpop.f32.mrf.mxu0  ;;  %604 = vst.msk [vmem:[#allocation2 + $0xc1] sm:$0xff] %vm589_vm2, %v586_v41 }
  0xb0   : > { %v545_v43 = vpop.f32.mrf.mxu1  ;;  %v575_v44 = vmax.f32 %v533_v42, 0.0 }
  0xb1   : > { %v579_v45 = vmax.f32 %v545_v43, 0.0 }
  0xb2   : > { %593 = vst.msk [vmem:[#allocation2 + $0x39] sm:$0xff] %vm589_vm2, %v575_v44 }
  0xb3   : > { %597 = vst.msk [vmem:[#allocation2 + $0x69] sm:$0xff] %vm589_vm2, %v579_v45  ;;  %v557_v46 = vpop.f32.mrf.mxu2  ;;  %609 = sbr.rel (%p2377_p10) target bundleno = 187 (0xbb), region = 48 }
  0xb4   : > { %v569_v47 = vpop.f32.mrf.mxu3  ;;  %v583_v48 = vmax.f32 %v557_v46, 0.0 }
  0xb5   : > { %v587_v49 = vmax.f32 %v569_v47, 0.0 }
  0xb6   : > { %601 = vst.msk [vmem:[#allocation2 + $0x99] sm:$0xff] %vm589_vm2, %v583_v48 }
  0xb7   : > { %605 = vst.msk [vmem:[#allocation2 + $0xc9] sm:$0xff] %vm589_vm2, %v587_v49 }
  0xb8   : > { %v2658_v50 = vmov 0.0  }
  0xb9   : > { %610 = vst.msk [vmem:[#allocation2 + $0x1] sm:$0xff] %vm589_vm2, %v2658_v50 }
  0xba   : > { %611 = vst.msk [vmem:[#allocation2 + $0x9] sm:$0xff] %vm589_vm2, %v2658_v50 }
  0xbb PF: > { %p2378_p11 = scmp.le.s32.totalorder %s2639_s21, 0 }
  0xbd   : > { %615 = sbr.rel (%p2378_p11) target bundleno = 326 (0x146), region = 52 }
  0xc2   : > { %v618_v51 = vld [vmem:[%s3509_s3] sm:$0xff]  ;;  %v617_v53 = vld [vmem:[%s2828_s13 + $0x8] sm:$0xff] }
  0xc3   : > { %v616_v52 = vld [vmem:[%s2828_s13] sm:$0xff]  ;;  %640 = vmatpush.msra.mxu0 %v618_v51  ;;  %2570 = vmatpush.msra.mxu1 %v618_v51 }
  0xc4   : > { %2379 = vmatmul.msk.f32.vlgmr.msra.gmra.mxu0 %vm458_vm1, %v616_v52  ;;  %2380 = vmatmul.msk.f32.vlgmr.msra.gmra.mxu1 %vm458_vm1, %v617_v53 }
 0x141   : > { %v642_v54 = vpop.f32.mrf.mxu0  ;;  %v645_v55 = vpop.f32.mrf.mxu1 }
 0x142   : > { %v648_v56 = vmax.f32 %v642_v54, 0.0  ;;  %v649_v57 = vmax.f32 %v645_v55, 0.0 }
 0x144   : > { %650 = vst.msk [vmem:[#allocation2 + $0x1] sm:$0xff] %vm589_vm2, %v648_v56 }
 0x145   : > { %651 = vst.msk [vmem:[#allocation2 + $0x9] sm:$0xff] %vm589_vm2, %v649_v57 }
 0x146 PF: > { %p2381_p12 = scmp.ne.s32.totalorder %s2639_s21, 1 }
 0x148   : > { %655 = sbr.rel (%p2381_p12) target bundleno = 336 (0x150), region = 56 }
 0x14d   : > { %v2659_v58 = vmov 0.0  }
 0x14e   : > { %657 = vst.msk [vmem:[#allocation2 + $0xd9] sm:$0xff] %vm589_vm2, %v2659_v58 }
 0x14f   : > { %658 = vst.msk [vmem:[#allocation2 + $0xe1] sm:$0xff] %vm589_vm2, %v2659_v58 }
 0x150 PF: > { %p2382_p13 = scmp.ge.s32.totalorder %s2639_s21, 1 }
 0x152   : > { %662 = sbr.rel (%p2382_p13) target bundleno = 475 (0x1db), region = 60 }
 0x157   : > { %v665_v59 = vld [vmem:[%s3509_s3] sm:$0xff]  ;;  %v664_v61 = vld [vmem:[%s2841_s15 + $0x8] sm:$0xff] }
 0x158   : > { %v663_v60 = vld [vmem:[%s2841_s15] sm:$0xff]  ;;  %687 = vmatpush.msra.mxu0 %v665_v59  ;;  %2571 = vmatpush.msra.mxu1 %v665_v59 }
 0x159   : > { %2383 = vmatmul.msk.f32.vlgmr.msra.gmra.mxu0 %vm458_vm1, %v663_v60  ;;  %2384 = vmatmul.msk.f32.vlgmr.msra.gmra.mxu1 %vm458_vm1, %v664_v61 }
 0x1d6   : > { %v689_v62 = vpop.f32.mrf.mxu0  ;;  %v692_v63 = vpop.f32.mrf.mxu1 }
 0x1d7   : > { %v695_v0 = vmax.f32 %v689_v62, 0.0  ;;  %v696_v1 = vmax.f32 %v692_v63, 0.0 }
 0x1d9   : > { %698 = vst.msk [vmem:[#allocation2 + $0xd9] sm:$0xff] %vm589_vm2, %v695_v0 }
 0x1da   : > { %699 = vst.msk [vmem:[#allocation2 + $0xe1] sm:$0xff] %vm589_vm2, %v696_v1 }
 0x1db PF: > { %v2385_v18 = vld [vmem:[%s3510_s4 + $0x4] sm:$0xf]  ;;  %vm783_vm3 = vcmask 1043456   ;;  %v716_v19 = vld [vmem:[%s3510_s4] sm:$0xf]  ;;  %v2973_v27 = vld [vmem:[#allocation2 + $0x69] sm:$0xff] }
 0x1dc   : > { %v2947_v20 = vld [vmem:[#allocation2 + $0x61] sm:$0xff]  ;;  %2572 = vmatpush.msk.msra.mxu2 %vm783_vm3, %v2385_v18  ;;  %2573 = vmatpush.msk.msra.mxu3 %vm783_vm3, %v716_v19  ;;  %v2438_v23 = vld [vmem:[%s3510_s4 + $0xc] sm:$0xf]  ;;  %v2456_v26 = vld [vmem:[%s3510_s4 + $0x10] sm:$0xf] }
 0x1dd   : > { %v2951_v21 = vld [vmem:[#allocation2 + $0x60] sm:$0xff]  ;;  %v2420_v22 = vld [vmem:[%s3510_s4 + $0x8] sm:$0xf]  ;;  %2395 = vmatmul.msk.f32.vlgmr.msra.gmra.mxu2 %vm589_vm2, %v2947_v20  ;;  %2386 = vmatpush.msk.msra.mxu0 %vm783_vm3, %v2385_v18  ;;  %v2985_v32 = vld [vmem:[#allocation2 + $0x78] sm:$0xff] }
 0x1de   : > { %2412 = vmatmul.msk.f32.vlgmr.msra.gmra.mxu3 %vm589_vm2, %v2951_v21  ;;  %v717_v24 = vld [vmem:[#allocation2 + $0x1] sm:$0xff]  ;;  %2421 = vmatpush.msk.msrb.mxu2 %vm783_vm3, %v2420_v22  ;;  %v718_v29 = vld [vmem:[#allocation2 + $0x9] sm:$0xff]  ;;  %v2983_v31 = vld [vmem:[#allocation2 + $0x79] sm:$0xff] }
 0x1df   : > { %2439 = vmatpush.msk.msrb.mxu3 %vm783_vm3, %v2438_v23  ;;  %v700_v25 = vld [vmem:[#allocation2] sm:$0xff]  ;;  %2403 = vmatpush.msk.msra.mxu1 %vm783_vm3, %v716_v19  ;;  %v2975_v28 = vld [vmem:[#allocation2 + $0x68] sm:$0xff]  ;;  %v702_v34 = vld [vmem:[#allocation2 + $0x18] sm:$0xff] }
 0x1e0   : > { %2387 = vmatmul.msk.f32.vlgmr.msra.gmra.mxu0 %vm589_vm2, %v717_v24  ;;  %2404 = vmatmul.msk.f32.vlgmr.msra.gmra.mxu1 %vm589_vm2, %v700_v25  ;;  %v701_v30 = vld [vmem:[#allocation2 + $0x8] sm:$0xff]  ;;  %v719_v33 = vld [vmem:[#allocation2 + $0x19] sm:$0xff]  ;;  %v3003_v39 = vld [vmem:[#allocation2 + $0x91] sm:$0xff] }
 0x1e1   : > { %2457 = vmatpush.msk.msrb.mxu0 %vm783_vm3, %v2456_v26  ;;  %v2993_v35 = vld [vmem:[#allocation2 + $0x81] sm:$0xff]  ;;  %v3005_v40 = vld [vmem:[#allocation2 + $0x90] sm:$0xff]  ;;  %v2492_v43 = vld [vmem:[%s3510_s4 + $0x18] sm:$0xf] }
 0x1e2   : > { %v2995_v36 = vld [vmem:[#allocation2 + $0x80] sm:$0xff]  ;;  %v3011_v41 = vld [vmem:[#allocation2 + $0x31] sm:$0xff]  ;;  %2493 = vmatpush.msk.msra.mxu2 %vm783_vm3, %v2492_v43  ;;  %v2510_v44 = vld [vmem:[%s3510_s4 + $0x1c] sm:$0xf] }
 0x1e3   : > { %v720_v37 = vld [vmem:[#allocation2 + $0x21] sm:$0xff]  ;;  %v3013_v42 = vld [vmem:[#allocation2 + $0x30] sm:$0xff]  ;;  %2511 = vmatpush.msk.msra.mxu3 %vm783_vm3, %v2510_v44  ;;  %v3027_v45 = vld [vmem:[#allocation2 + $0x99] sm:$0xff] }
 0x1e4   : > { %v703_v38 = vld [vmem:[#allocation2 + $0x20] sm:$0xff]  ;;  %v3029_v46 = vld [vmem:[#allocation2 + $0x98] sm:$0xff]  ;;  %v2474_v50 = vld [vmem:[%s3510_s4 + $0x14] sm:$0xf] }
 0x1e5   : > { %2396 = vmatmul.msk.f32.gmra.mxu2 %vm589_vm2, %v2973_v27  ;;  %v3031_v47 = vld [vmem:[#allocation2 + $0x39] sm:$0xff]  ;;  %2475 = vmatpush.msk.msrb.mxu1 %vm783_vm3, %v2474_v50  ;;  %v3051_v51 = vld [vmem:[#allocation2 + $0xa9] sm:$0xff]  ;;  %v3067_v55 = vld [vmem:[#allocation2 + $0xb1] sm:$0xff] }
 0x1e6   : > { %2413 = vmatmul.msk.f32.gmra.mxu3 %vm589_vm2, %v2975_v28  ;;  %v3037_v48 = vld [vmem:[#allocation2 + $0x38] sm:$0xff]  ;;  %v2528_v49 = vld [vmem:[%s3510_s4 + $0x20] sm:$0xf]  ;;  %v3053_v52 = vld [vmem:[#allocation2 + $0xa8] sm:$0xff] }
 0x1e7   : > { %2529 = vmatpush.msk.msra.mxu0 %vm783_vm3, %v2528_v49  ;;  %v3059_v53 = vld [vmem:[#allocation2 + $0x49] sm:$0xff]  ;;  %v3075_v57 = vld [vmem:[#allocation2 + $0x51] sm:$0xff]  ;;  %v1418_v60 = vld [vmem:[#allocation2 + $0x1a] sm:$0xff] }
 0x1e8   : > { %2388 = vmatmul.msk.f32.gmra.mxu0 %vm589_vm2, %v718_v29  ;;  %2405 = vmatmul.msk.f32.gmra.mxu1 %vm589_vm2, %v701_v30  ;;  %v3061_v54 = vld [vmem:[#allocation2 + $0x48] sm:$0xff]  ;;  %v3069_v56 = vld [vmem:[#allocation2 + $0xb0] sm:$0xff]  ;;  %v3103_v0 = vld [vmem:[#allocation2 + $0x3a] sm:$0xff] }
 0x1e9   : > { %v3077_v58 = vld [vmem:[#allocation2 + $0x50] sm:$0xff]  ;;  %v968_v59 = vld [vmem:[#allocation2 + $0x2] sm:$0xff]  ;;  %v3155_v24 = vld [vmem:[#allocation2 + $0x7a] sm:$0xff] }
 0x1ea   : > { %v969_v61 = vld [vmem:[#allocation2 + $0xa] sm:$0xff]  ;;  %v1419_v62 = vld [vmem:[#allocation2 + $0x22] sm:$0xff]  ;;  %v3094_v63 = vld [vmem:[#allocation2 + $0x32] sm:$0xff] }
 0x1eb   : > { %v3113_v1 = vld [vmem:[#allocation2 + $0x4a] sm:$0xff]  ;;  %v3123_v18 = vld [vmem:[#allocation2 + $0x52] sm:$0xff]  ;;  %v3133_v19 = vld [vmem:[#allocation2 + $0x62] sm:$0xff] }
 0x1ec   : > { %v3143_v22 = vld [vmem:[#allocation2 + $0x6a] sm:$0xff]  ;;  %v3183_v44 = vld [vmem:[#allocation2 + $0x92] sm:$0xff]  ;;  %v3236_v3 = vld [vmem:[#allocation2 + $0xc0] sm:$0xff] }
 0x1ed   : > { %2397 = vmatmul.msk.f32.gmra.mxu2 %vm589_vm2, %v2983_v31  ;;  %v3225_v15 = vld [vmem:[#allocation2 + $0xb2] sm:$0xff]  ;;  %v3245_v6 = vld [vmem:[#allocation2 + $0xc1] sm:$0xff]  ;;  %v3263_v9 = vld [vmem:[#allocation2 + $0xc9] sm:$0xff] }
 0x1ee   : > { %2414 = vmatmul.msk.f32.gmra.mxu3 %vm589_vm2, %v2985_v32  ;;  %v3255_v17 = vld [vmem:[#allocation2 + $0xc8] sm:$0xff]  ;;  %3553 = vst [vmem:[#allocation23_spill] sm:$0xff] %v3263_v9 }
 0x1ef   : > { %3552 = vst [vmem:[#allocation22_spill] sm:$0xff] %v3255_v17  ;;  %v3265_v5 = vld [vmem:[#allocation2 + $0xca] sm:$0xff] }
 0x1f0   : > { %2389 = vmatmul.msk.f32.gmra.mxu0 %vm589_vm2, %v719_v33  ;;  %2406 = vmatmul.msk.f32.gmra.mxu1 %vm589_vm2, %v702_v34  ;;  %3554 = vst [vmem:[#allocation24_spill] sm:$0xff] %v3265_v5 }
 0x1f5   : > { %2398 = vmatmul.msk.f32.gmra.mxu2 %vm589_vm2, %v2993_v35 }
 0x1f6   : > { %2415 = vmatmul.msk.f32.gmra.mxu3 %vm589_vm2, %v2995_v36 }
 0x1f8   : > { %2390 = vmatmul.msk.f32.gmra.mxu0 %vm589_vm2, %v720_v37  ;;  %2407 = vmatmul.msk.f32.gmra.mxu1 %vm589_vm2, %v703_v38 }
 0x1fd   : > { %2399 = vmatmul.msk.f32.gmra.mxu2 %vm589_vm2, %v3003_v39 }
 0x1fe   : > { %2416 = vmatmul.msk.f32.gmra.mxu3 %vm589_vm2, %v3005_v40 }
 0x200   : > { %2391 = vmatmul.msk.f32.gmra.mxu0 %vm589_vm2, %v3011_v41  ;;  %2408 = vmatmul.msk.f32.gmra.mxu1 %vm589_vm2, %v3013_v42 }
 0x205   : > { %2400 = vmatmul.msk.f32.gmra.mxu2 %vm589_vm2, %v3027_v45 }
 0x206   : > { %2417 = vmatmul.msk.f32.gmra.mxu3 %vm589_vm2, %v3029_v46 }
 0x208   : > { %2392 = vmatmul.msk.f32.gmra.mxu0 %vm589_vm2, %v3031_v47  ;;  %2409 = vmatmul.msk.f32.gmra.mxu1 %vm589_vm2, %v3037_v48 }
 0x20d   : > { %2401 = vmatmul.msk.f32.gmra.mxu2 %vm589_vm2, %v3051_v51 }
 0x20e   : > { %2418 = vmatmul.msk.f32.gmra.mxu3 %vm589_vm2, %v3053_v52 }
 0x210   : > { %2393 = vmatmul.msk.f32.gmra.mxu0 %vm589_vm2, %v3059_v53  ;;  %2410 = vmatmul.msk.f32.gmra.mxu1 %vm589_vm2, %v3061_v54 }
 0x215   : > { %2402 = vmatmul.msk.f32.gmra.mxu2 %vm589_vm2, %v3067_v55 }
 0x216   : > { %2419 = vmatmul.msk.f32.gmra.mxu3 %vm589_vm2, %v3069_v56 }
 0x218   : > { %2394 = vmatmul.msk.f32.gmra.mxu0 %vm589_vm2, %v3075_v57  ;;  %2411 = vmatmul.msk.f32.gmra.mxu1 %vm589_vm2, %v3077_v58 }
 0x21d   : > { %2422 = vmatmul.msk.f32.vlgmr.msrb.gmra.mxu2 %vm589_vm2, %v968_v59 }
 0x21e   : > { %2440 = vmatmul.msk.f32.vlgmr.msrb.gmra.mxu3 %vm589_vm2, %v702_v34 }
 0x220   : > { %2458 = vmatmul.msk.f32.vlgmr.msrb.gmra.mxu0 %vm589_vm2, %v719_v33  ;;  %2476 = vmatmul.msk.f32.vlgmr.msrb.gmra.mxu1 %vm589_vm2, %v1418_v60  ;;  %v3169_v33 = vld [vmem:[#allocation2 + $0x82] sm:$0xff] }
 0x225   : > { %2423 = vmatmul.msk.f32.gmra.mxu2 %vm589_vm2, %v969_v61  ;;  %v3197_v61 = vld [vmem:[#allocation2 + $0x9a] sm:$0xff] }
 0x226   : > { %2441 = vmatmul.msk.f32.gmra.mxu3 %vm589_vm2, %v703_v38 }
 0x228   : > { %2459 = vmatmul.msk.f32.gmra.mxu0 %vm589_vm2, %v720_v37  ;;  %2477 = vmatmul.msk.f32.gmra.mxu1 %vm589_vm2, %v1419_v62 }
 0x22d   : > { %2424 = vmatmul.msk.f32.gmra.mxu2 %vm589_vm2, %v1418_v60 }
 0x22e   : > { %2442 = vmatmul.msk.f32.gmra.mxu3 %vm589_vm2, %v3013_v42 }
 0x230   : > { %2460 = vmatmul.msk.f32.gmra.mxu0 %vm589_vm2, %v3011_v41  ;;  %2478 = vmatmul.msk.f32.gmra.mxu1 %vm589_vm2, %v3094_v63 }
 0x235   : > { %2425 = vmatmul.msk.f32.gmra.mxu2 %vm589_vm2, %v1419_v62 }
 0x236   : > { %2443 = vmatmul.msk.f32.gmra.mxu3 %vm589_vm2, %v3037_v48 }
 0x238   : > { %2461 = vmatmul.msk.f32.gmra.mxu0 %vm589_vm2, %v3031_v47  ;;  %2479 = vmatmul.msk.f32.gmra.mxu1 %vm589_vm2, %v3103_v0 }
 0x23d   : > { %2426 = vmatmul.msk.f32.gmra.mxu2 %vm589_vm2, %v3094_v63 }
 0x23e   : > { %2444 = vmatmul.msk.f32.gmra.mxu3 %vm589_vm2, %v3061_v54 }
 0x240   : > { %2462 = vmatmul.msk.f32.gmra.mxu0 %vm589_vm2, %v3059_v53  ;;  %2480 = vmatmul.msk.f32.gmra.mxu1 %vm589_vm2, %v3113_v1 }
 0x245   : > { %2427 = vmatmul.msk.f32.gmra.mxu2 %vm589_vm2, %v3103_v0 }
 0x246   : > { %2445 = vmatmul.msk.f32.gmra.mxu3 %vm589_vm2, %v3077_v58 }
 0x248   : > { %2463 = vmatmul.msk.f32.gmra.mxu0 %vm589_vm2, %v3075_v57  ;;  %2481 = vmatmul.msk.f32.gmra.mxu1 %vm589_vm2, %v3123_v18 }
 0x24d   : > { %2428 = vmatmul.msk.f32.gmra.mxu2 %vm589_vm2, %v3113_v1 }
 0x24e   : > { %2446 = vmatmul.msk.f32.gmra.mxu3 %vm589_vm2, %v2951_v21 }
 0x250   : > { %2464 = vmatmul.msk.f32.gmra.mxu0 %vm589_vm2, %v2947_v20  ;;  %2482 = vmatmul.msk.f32.gmra.mxu1 %vm589_vm2, %v3133_v19 }
 0x255   : > { %2429 = vmatmul.msk.f32.gmra.mxu2 %vm589_vm2, %v3123_v18 }
 0x256   : > { %2447 = vmatmul.msk.f32.gmra.mxu3 %vm589_vm2, %v2975_v28 }
 0x258   : > { %2465 = vmatmul.msk.f32.gmra.mxu0 %vm589_vm2, %v2973_v27  ;;  %2483 = vmatmul.msk.f32.gmra.mxu1 %vm589_vm2, %v3143_v22 }
 0x25d   : > { %2430 = vmatmul.msk.f32.gmra.mxu2 %vm589_vm2, %v3133_v19  ;;  %v3153_v23 = vpop.f32.mrf.mxu0  ;;  %v920_v14 = vpop.f32.mrf.mxu1 }
 0x25e   : > { %2448 = vmatmul.msk.f32.gmra.mxu3 %vm589_vm2, %v2985_v32  ;;  %v921_v4 = vadd.f32 %v920_v14, %v3153_v23 }
 0x260   : > { %v828_v25 = vpop.f32.mrf.mxu2  ;;  %2466 = vmatmul.msk.f32.gmra.mxu0 %vm589_vm2, %v2983_v31  ;;  %2484 = vmatmul.msk.f32.gmra.mxu1 %vm589_vm2, %v3155_v24 }
 0x261   : > { %v944_v26 = vpop.f32.mrf.mxu3 }
 0x262   : > { %v3161_v29 = vadd.f32 %v944_v26, %v828_v25 }
 0x265   : > { %2431 = vmatmul.msk.f32.gmra.mxu2 %vm589_vm2, %v3143_v22  ;;  %v3167_v30 = vpop.f32.mrf.mxu0  ;;  %v923_v16 = vpop.f32.mrf.mxu1 }
 0x266   : > { %2449 = vmatmul.msk.f32.gmra.mxu3 %vm589_vm2, %v2995_v36 }
 0x268   : > { %v831_v34 = vpop.f32.mrf.mxu2  ;;  %2467 = vmatmul.msk.f32.gmra.mxu0 %vm589_vm2, %v2993_v35  ;;  %2485 = vmatmul.msk.f32.gmra.mxu1 %vm589_vm2, %v3169_v33 }
 0x269   : > { %v947_v37 = vpop.f32.mrf.mxu3 }
 0x26a   : > { %v3175_v38 = vadd.f32 %v947_v37, %v831_v34  ;;  %v3211_v37 = vld [vmem:[#allocation2 + $0xaa] sm:$0xff] }
 0x26d   : > { %2432 = vmatmul.msk.f32.gmra.mxu2 %vm589_vm2, %v3155_v24  ;;  %v3181_v43 = vpop.f32.mrf.mxu0 }
 0x26e   : > { %2450 = vmatmul.msk.f32.gmra.mxu3 %vm589_vm2, %v3005_v40 }
 0x270   : > { %v834_v49 = vpop.f32.mrf.mxu2  ;;  %2468 = vmatmul.msk.f32.gmra.mxu0 %vm589_vm2, %v3003_v39  ;;  %2486 = vmatmul.msk.f32.gmra.mxu1 %vm589_vm2, %v3183_v44 }
 0x271   : > { %v950_v50 = vpop.f32.mrf.mxu3 }
 0x272   : > { %v3189_v59 = vadd.f32 %v950_v50, %v834_v49 }
 0x275   : > { %2433 = vmatmul.msk.f32.gmra.mxu2 %vm589_vm2, %v3169_v33  ;;  %v3195_v60 = vpop.f32.mrf.mxu0 }
 0x276   : > { %2451 = vmatmul.msk.f32.gmra.mxu3 %vm589_vm2, %v3029_v46 }
 0x278   : > { %v837_v62 = vpop.f32.mrf.mxu2  ;;  %2469 = vmatmul.msk.f32.gmra.mxu0 %vm589_vm2, %v3027_v45  ;;  %2487 = vmatmul.msk.f32.gmra.mxu1 %vm589_vm2, %v3197_v61 }
 0x279   : > { %v953_v25 = vpop.f32.mrf.mxu3 }
 0x27a   : > { %v3203_v26 = vadd.f32 %v953_v25, %v837_v62 }
 0x27d   : > { %2434 = vmatmul.msk.f32.gmra.mxu2 %vm589_vm2, %v3183_v44  ;;  %v3209_v34 = vpop.f32.mrf.mxu0 }
 0x27e   : > { %2452 = vmatmul.msk.f32.gmra.mxu3 %vm589_vm2, %v3053_v52 }
 0x280   : > { %v840_v49 = vpop.f32.mrf.mxu2  ;;  %2470 = vmatmul.msk.f32.gmra.mxu0 %vm589_vm2, %v3051_v51  ;;  %2488 = vmatmul.msk.f32.gmra.mxu1 %vm589_vm2, %v3211_v37 }
 0x281   : > { %v956_v50 = vpop.f32.mrf.mxu3 }
 0x282   : > { %v3217_v62 = vadd.f32 %v956_v50, %v840_v49  ;;  %v2035_v50 = vld [vmem:[%s3511_s5] sm:$0xf] }
 0x283   : > { %2546 = vmatpush.msk.msra.mxu1 %vm783_vm3, %v2035_v50 }
 0x284   : > { %3549 = vst [vmem:[#allocation19_spill] sm:$0xff] %v3217_v62 }
 0x285   : > { %2435 = vmatmul.msk.f32.gmra.mxu2 %vm589_vm2, %v3197_v61  ;;  %v3223_v25 = vpop.f32.mrf.mxu0 }
 0x286   : > { %2453 = vmatmul.msk.f32.gmra.mxu3 %vm589_vm2, %v3069_v56 }
 0x288   : > { %v843_v11 = vpop.f32.mrf.mxu2  ;;  %2471 = vmatmul.msk.f32.gmra.mxu0 %vm589_vm2, %v3067_v55  ;;  %2489 = vmatmul.msk.f32.gmra.mxu1 %vm589_vm2, %v3225_v15 }
 0x289   : > { %v959_v7 = vpop.f32.mrf.mxu3 }
 0x28a   : > { %v3231_v49 = vadd.f32 %v959_v7, %v843_v11  ;;  %v3247_v7 = vld [vmem:[#allocation2 + $0xc2] sm:$0xff] }
 0x28c   : > { %3550 = vst [vmem:[#allocation20_spill] sm:$0xff] %v3231_v49 }
 0x28d   : > { %2436 = vmatmul.msk.f32.gmra.mxu2 %vm589_vm2, %v3211_v37  ;;  %v3243_v10 = vpop.f32.mrf.mxu0 }
 0x28e   : > { %2454 = vmatmul.msk.f32.gmra.mxu3 %vm589_vm2, %v3236_v3 }
 0x290   : > { %v846_v11 = vpop.f32.mrf.mxu2  ;;  %2472 = vmatmul.msk.f32.gmra.mxu0 %vm589_vm2, %v3245_v6  ;;  %2490 = vmatmul.msk.f32.gmra.mxu1 %vm589_vm2, %v3247_v7 }
 0x291   : > { %v962_v2 = vpop.f32.mrf.mxu3 }
 0x292   : > { %v3253_v50 = vadd.f32 %v962_v2, %v846_v11 }
 0x294   : > { %3551 = vst [vmem:[#allocation21_spill] sm:$0xff] %v3253_v50 }
 0x295   : > { %2437 = vmatmul.msk.f32.gmra.mxu2 %vm589_vm2, %v3225_v15  ;;  %v3261_v13 = vpop.f32.mrf.mxu0 }
 0x296   : > { %2455 = vmatmul.msk.f32.gmra.mxu3 %vm589_vm2, %v3255_v17 }
 0x298   : > { %v849_v12 = vpop.f32.mrf.mxu2  ;;  %2473 = vmatmul.msk.f32.gmra.mxu0 %vm589_vm2, %v3263_v9  ;;  %2491 = vmatmul.msk.f32.gmra.mxu1 %vm589_vm2, %v3265_v5  ;;  %v926_v9 = vpop.f32.mrf.mxu1 }
 0x299   : > { %v965_v8 = vpop.f32.mrf.mxu3 }
 0x29a   : > { %v3271_v2 = vadd.f32 %v965_v8, %v849_v12  ;;  %v924_v12 = vadd.f32 %v923_v16, %v3167_v30 }
 0x29d   : > { %2494 = vmatmul.msk.f32.vlgmr.msra.gmra.mxu2 %vm589_vm2, %v3013_v42  ;;  %v1354_v11 = vpop.f32.mrf.mxu0 }
 0x29e   : > { %2512 = vmatmul.msk.f32.vlgmr.msra.gmra.mxu3 %vm589_vm2, %v3011_v41 }
 0x2a0   : > { %v1054_v50 = vpop.f32.mrf.mxu2  ;;  %2530 = vmatmul.msk.f32.vlgmr.msra.gmra.mxu0 %vm589_vm2, %v3094_v63  ;;  %v929_v63 = vpop.f32.mrf.mxu1 }
 0x2a1   : > { %v1204_v49 = vpop.f32.mrf.mxu3  ;;  %v1102_v17 = vadd.f32 %v1054_v50, %v921_v4 }
 0x2a3   : > { %v1252_v62 = vadd.f32 %v1204_v49, %v1102_v17 }
 0x2a5   : > { %v3280_v5 = vadd.f32 %v1354_v11, %v1252_v62  ;;  %2495 = vmatmul.msk.f32.gmra.mxu2 %vm589_vm2, %v3037_v48  ;;  %v1357_v8 = vpop.f32.mrf.mxu0  ;;  %v927_v48 = vadd.f32 %v926_v9, %v3181_v43 }
 0x2a6   : > { %2513 = vmatmul.msk.f32.gmra.mxu3 %vm589_vm2, %v3031_v47 }
 0x2a8   : > { %v1057_v14 = vpop.f32.mrf.mxu2  ;;  %2531 = vmatmul.msk.f32.gmra.mxu0 %vm589_vm2, %v3103_v0  ;;  %v932_v62 = vpop.f32.mrf.mxu1 }
 0x2a9   : > { %v1207_v41 = vpop.f32.mrf.mxu3  ;;  %v1103_v42 = vadd.f32 %v1057_v14, %v924_v12 }
 0x2ab   : > { %v1253_v4 = vadd.f32 %v1207_v41, %v1103_v42 }
 0x2ad   : > { %v3289_v17 = vadd.f32 %v1357_v8, %v1253_v4  ;;  %2496 = vmatmul.msk.f32.gmra.mxu2 %vm589_vm2, %v3061_v54  ;;  %v1360_v47 = vpop.f32.mrf.mxu0  ;;  %v930_v54 = vadd.f32 %v929_v63, %v3195_v60 }
 0x2ae   : > { %2514 = vmatmul.msk.f32.gmra.mxu3 %vm589_vm2, %v3059_v53 }
 0x2b0   : > { %v1060_v16 = vpop.f32.mrf.mxu2  ;;  %2532 = vmatmul.msk.f32.gmra.mxu0 %vm589_vm2, %v3113_v1  ;;  %v935_v8 = vpop.f32.mrf.mxu1 }
 0x2b1   : > { %v1210_v23 = vpop.f32.mrf.mxu3  ;;  %v1104_v0 = vadd.f32 %v1060_v16, %v927_v48 }
 0x2b3   : > { %v1254_v30 = vadd.f32 %v1210_v23, %v1104_v0 }
 0x2b5   : > { %v3298_v49 = vadd.f32 %v1360_v47, %v1254_v30  ;;  %2497 = vmatmul.msk.f32.gmra.mxu2 %vm589_vm2, %v3077_v58  ;;  %v1363_v53 = vpop.f32.mrf.mxu0 }
 0x2b6   : > { %2515 = vmatmul.msk.f32.gmra.mxu3 %vm589_vm2, %v3075_v57  ;;  %v933_v57 = vadd.f32 %v932_v62, %v3209_v34 }
 0x2b8   : > { %v1063_v9 = vpop.f32.mrf.mxu2  ;;  %2533 = vmatmul.msk.f32.gmra.mxu0 %vm589_vm2, %v3123_v18 }
 0x2b9   : > { %v1213_v43 = vpop.f32.mrf.mxu3  ;;  %v1105_v1 = vadd.f32 %v1063_v9, %v930_v54 }
 0x2bb   : > { %v1255_v50 = vadd.f32 %v1213_v43, %v1105_v1 }
 0x2bd   : > { %v3307_v11 = vadd.f32 %v1363_v53, %v1255_v50  ;;  %2498 = vmatmul.msk.f32.gmra.mxu2 %vm589_vm2, %v2951_v21  ;;  %v1366_v58 = vpop.f32.mrf.mxu0  ;;  %v936_v21 = vadd.f32 %v935_v8, %v3223_v25 }
 0x2be   : > { %2516 = vmatmul.msk.f32.gmra.mxu3 %vm589_vm2, %v2947_v20 }
 0x2c0   : > { %v1066_v60 = vpop.f32.mrf.mxu2  ;;  %2534 = vmatmul.msk.f32.gmra.mxu0 %vm589_vm2, %v3133_v19  ;;  %v938_v19 = vpop.f32.mrf.mxu1 }
 0x2c1   : > { %v1216_v12 = vpop.f32.mrf.mxu3  ;;  %v1106_v18 = vadd.f32 %v1066_v60, %v933_v57 }
 0x2c3   : > { %v1256_v14 = vadd.f32 %v1216_v12, %v1106_v18  ;;  %v3555_v18 = vld [vmem:[#allocation19_spill] sm:$0xff] }
 0x2c5   : > { %v3316_v41 = vadd.f32 %v1366_v58, %v1256_v14  ;;  %2499 = vmatmul.msk.f32.gmra.mxu2 %vm589_vm2, %v2975_v28  ;;  %v1369_v20 = vpop.f32.mrf.mxu0  ;;  %v939_v28 = vadd.f32 %v938_v19, %v3243_v10  ;;  %v3559_v19 = vld [vmem:[#allocation20_spill] sm:$0xff] }
 0x2c6   : > { %2517 = vmatmul.msk.f32.gmra.mxu3 %vm589_vm2, %v2973_v27 }
 0x2c8   : > { %v1069_v34 = vpop.f32.mrf.mxu2  ;;  %2535 = vmatmul.msk.f32.gmra.mxu0 %vm589_vm2, %v3143_v22  ;;  %v941_v23 = vpop.f32.mrf.mxu1 }
 0x2c9   : > { %v1219_v42 = vpop.f32.mrf.mxu3  ;;  %v1107_v63 = vadd.f32 %v1069_v34, %v936_v21  ;;  %v3557_v21 = vld [vmem:[#allocation23_spill] sm:$0xff] }
 0x2cb   : > { %v1257_v4 = vadd.f32 %v1219_v42, %v1107_v63  ;;  %v3558_v63 = vld [vmem:[#allocation24_spill] sm:$0xff] }
 0x2cd   : > { %v3325_v47 = vadd.f32 %v1369_v20, %v1257_v4  ;;  %2500 = vmatmul.msk.f32.gmra.mxu2 %vm589_vm2, %v2985_v32  ;;  %v1372_v27 = vpop.f32.mrf.mxu0  ;;  %v942_v32 = vadd.f32 %v941_v23, %v3261_v13  ;;  %v3556_v20 = vld [vmem:[#allocation22_spill] sm:$0xff]  ;;  %v1583_v4 = vld [vmem:[#allocation2 + $0xd8] sm:$0xff] }
 0x2ce   : > { %2518 = vmatmul.msk.f32.gmra.mxu3 %vm589_vm2, %v2983_v31 }
 0x2d0   : > { %v1072_v25 = vpop.f32.mrf.mxu2  ;;  %2536 = vmatmul.msk.f32.gmra.mxu0 %vm589_vm2, %v3155_v24  ;;  %v1504_v60 = vpop.f32.mrf.mxu1 }
 0x2d1   : > { %v1222_v48 = vpop.f32.mrf.mxu3  ;;  %v1108_v22 = vadd.f32 %v1072_v25, %v939_v28 }
 0x2d3   : > { %v1258_v16 = vadd.f32 %v1222_v48, %v1108_v22  ;;  %v1883_v22 = vld [vmem:[#allocation2 + $0xda] sm:$0xff] }
 0x2d5   : > { %v3334_v0 = vadd.f32 %v1372_v27, %v1258_v16  ;;  %2501 = vmatmul.msk.f32.gmra.mxu2 %vm589_vm2, %v2995_v36  ;;  %v1375_v31 = vpop.f32.mrf.mxu0  ;;  %v1733_v27 = vld [vmem:[#allocation2 + $0xd9] sm:$0xff] }
 0x2d6   : > { %2519 = vmatmul.msk.f32.gmra.mxu3 %vm589_vm2, %v2993_v35 }
 0x2d8   : > { %v1075_v10 = vpop.f32.mrf.mxu2  ;;  %2537 = vmatmul.msk.f32.gmra.mxu0 %vm589_vm2, %v3169_v33  ;;  %v1507_v34 = vpop.f32.mrf.mxu1 }
 0x2d9   : > { %v1225_v30 = vpop.f32.mrf.mxu3  ;;  %v1109_v24 = vadd.f32 %v1075_v10, %v942_v32  ;;  %v3560_v32 = vld [vmem:[#allocation21_spill] sm:$0xff] }
 0x2db   : > { %v1259_v62 = vadd.f32 %v1225_v30, %v1109_v24  ;;  %v1584_v30 = vld [vmem:[#allocation2 + $0xe0] sm:$0xff] }
 0x2dc   : > { %v1734_v24 = vld [vmem:[#allocation2 + $0xe1] sm:$0xff] }
 0x2dd   : > { %v3343_v53 = vadd.f32 %v1375_v31, %v1259_v62  ;;  %2502 = vmatmul.msk.f32.gmra.mxu2 %vm589_vm2, %v3005_v40  ;;  %v1378_v36 = vpop.f32.mrf.mxu0 }
 0x2de   : > { %2520 = vmatmul.msk.f32.gmra.mxu3 %vm589_vm2, %v3003_v39 }
 0x2e0   : > { %v1078_v35 = vpop.f32.mrf.mxu2  ;;  %2538 = vmatmul.msk.f32.gmra.mxu0 %vm589_vm2, %v3183_v44  ;;  %v1510_v31 = vpop.f32.mrf.mxu1 }
 0x2e1   : > { %v1228_v54 = vpop.f32.mrf.mxu3  ;;  %v1110_v13 = vadd.f32 %v1078_v35, %v3161_v29 }
 0x2e3   : > { %v1260_v9 = vadd.f32 %v1228_v54, %v1110_v13  ;;  %v1884_v54 = vld [vmem:[#allocation2 + $0xe2] sm:$0xff] }
 0x2e5   : > { %v3352_v33 = vadd.f32 %v1378_v36, %v1260_v9  ;;  %2503 = vmatmul.msk.f32.gmra.mxu2 %vm589_vm2, %v3029_v46  ;;  %v1381_v40 = vpop.f32.mrf.mxu0 }
 0x2e6   : > { %2521 = vmatmul.msk.f32.gmra.mxu3 %vm589_vm2, %v3027_v45 }
 0x2e8   : > { %v1081_v43 = vpop.f32.mrf.mxu2  ;;  %2539 = vmatmul.msk.f32.gmra.mxu0 %vm589_vm2, %v3197_v61 }
 0x2e9   : > { %v1231_v39 = vpop.f32.mrf.mxu3  ;;  %v1111_v1 = vadd.f32 %v1081_v43, %v3175_v38  ;;  %v1513_v43 = vpop.f32.mrf.mxu1 }
 0x2eb   : > { %v1261_v44 = vadd.f32 %v1231_v39, %v1111_v1 }
 0x2ed   : > { %v3361_v50 = vadd.f32 %v1381_v40, %v1261_v44  ;;  %2504 = vmatmul.msk.f32.gmra.mxu2 %vm589_vm2, %v3053_v52  ;;  %v1384_v46 = vpop.f32.mrf.mxu0 }
 0x2ee   : > { %2522 = vmatmul.msk.f32.gmra.mxu3 %vm589_vm2, %v3051_v51 }
 0x2f0   : > { %v1084_v29 = vpop.f32.mrf.mxu2  ;;  %2540 = vmatmul.msk.f32.gmra.mxu0 %vm589_vm2, %v3211_v37 }
 0x2f1   : > { %v1234_v45 = vpop.f32.mrf.mxu3  ;;  %v1112_v58 = vadd.f32 %v1084_v29, %v3189_v59 }
 0x2f3   : > { %v1262_v61 = vadd.f32 %v1234_v45, %v1112_v58 }
 0x2f5   : > { %v3370_v57 = vadd.f32 %v1384_v46, %v1262_v61  ;;  %2505 = vmatmul.msk.f32.gmra.mxu2 %vm589_vm2, %v3069_v56  ;;  %v1387_v52 = vpop.f32.mrf.mxu0  ;;  %v1552_v46 = vadd.f32 %v1504_v60, %v3280_v5  ;;  %v1554_v5 = vadd.f32 %v1510_v31, %v3298_v49 }
 0x2f6   : > { %2523 = vmatmul.msk.f32.gmra.mxu3 %vm589_vm2, %v3067_v55 }
 0x2f8   : > { %v1087_v38 = vpop.f32.mrf.mxu2  ;;  %2541 = vmatmul.msk.f32.gmra.mxu0 %vm589_vm2, %v3225_v15 }
 0x2f9   : > { %v1237_v51 = vpop.f32.mrf.mxu3  ;;  %v1113_v8 = vadd.f32 %v1087_v38, %v3203_v26 }
 0x2fb   : > { %v1263_v37 = vadd.f32 %v1237_v51, %v1113_v8  ;;  %v1553_v8 = vadd.f32 %v1507_v34, %v3289_v17 }
 0x2fd   : > { %v3379_v59 = vadd.f32 %v1387_v52, %v1263_v37  ;;  %2506 = vmatmul.msk.f32.gmra.mxu2 %vm589_vm2, %v3236_v3  ;;  %v1390_v56 = vpop.f32.mrf.mxu0  ;;  %v1516_v52 = vpop.f32.mrf.mxu1 }
 0x2fe   : > { %2524 = vmatmul.msk.f32.gmra.mxu3 %vm589_vm2, %v3245_v6 }
 0x300   : > { %v1090_v55 = vpop.f32.mrf.mxu2  ;;  %2542 = vmatmul.msk.f32.gmra.mxu0 %vm589_vm2, %v3247_v7 }
 0x301   : > { %v1240_v12 = vpop.f32.mrf.mxu3  ;;  %v1114_v15 = vadd.f32 %v1090_v55, %v3555_v18 }
 0x303   : > { %v1264_v14 = vadd.f32 %v1240_v12, %v1114_v15 }
 0x305   : > { %v3388_v26 = vadd.f32 %v1390_v56, %v1264_v14  ;;  %2507 = vmatmul.msk.f32.gmra.mxu2 %vm589_vm2, %v3556_v20  ;;  %v1393_v3 = vpop.f32.mrf.mxu0  ;;  %v1519_v60 = vpop.f32.mrf.mxu1 }
 0x306   : > { %2525 = vmatmul.msk.f32.gmra.mxu3 %vm589_vm2, %v3557_v21 }
 0x308   : > { %v1093_v6 = vpop.f32.mrf.mxu2  ;;  %2543 = vmatmul.msk.f32.gmra.mxu0 %vm589_vm2, %v3558_v63 }
 0x309   : > { %v1243_v42 = vpop.f32.mrf.mxu3  ;;  %v1115_v7 = vadd.f32 %v1093_v6, %v3559_v19 }
 0x30b   : > { %v1265_v28 = vadd.f32 %v1243_v42, %v1115_v7  ;;  %v1555_v42 = vadd.f32 %v1513_v43, %v3307_v11 }
 0x30d   : > { %v3397_v25 = vadd.f32 %v1393_v3, %v1265_v28  ;;  %2508 = vmatmul.msk.f32.gmra.mxu2 %vm589_vm2, %v1583_v4  ;;  %v1396_v48 = vpop.f32.mrf.mxu0  ;;  %v1522_v4 = vpop.f32.mrf.mxu1 }
 0x30e   : > { %2526 = vmatmul.msk.f32.gmra.mxu3 %vm589_vm2, %v1733_v27 }
 0x310   : > { %v1096_v16 = vpop.f32.mrf.mxu2  ;;  %2544 = vmatmul.msk.f32.gmra.mxu0 %vm589_vm2, %v1883_v22  ;;  %v1556_v22 = vadd.f32 %v1516_v52, %v3316_v41 }
 0x311   : > { %v1246_v23 = vpop.f32.mrf.mxu3  ;;  %v1116_v10 = vadd.f32 %v1096_v16, %v3560_v32 }
 0x313   : > { %v1266_v62 = vadd.f32 %v1246_v23, %v1116_v10 }
 0x315   : > { %v3403_v36 = vadd.f32 %v1396_v48, %v1266_v62  ;;  %2509 = vmatmul.msk.f32.gmra.mxu2 %vm589_vm2, %v1584_v30  ;;  %v1399_v35 = vpop.f32.mrf.mxu0  ;;  %v1525_v10 = vpop.f32.mrf.mxu1  ;;  %v1557_v62 = vadd.f32 %v1519_v60, %v3325_v47 }
 0x316   : > { %2527 = vmatmul.msk.f32.gmra.mxu3 %vm589_vm2, %v1734_v24 }
 0x318   : > { %v1099_v13 = vpop.f32.mrf.mxu2  ;;  %2545 = vmatmul.msk.f32.gmra.mxu0 %vm589_vm2, %v1884_v54 }
 0x319   : > { %v1249_v9 = vpop.f32.mrf.mxu3  ;;  %v1117_v40 = vadd.f32 %v1099_v13, %v3271_v2 }
 0x31b   : > { %v1267_v39 = vadd.f32 %v1249_v9, %v1117_v40 }
 0x31d   : > { %v3409_v1 = vadd.f32 %v1399_v35, %v1267_v39  ;;  %v1955_v44 = vpop.f32.mrf.mxu0  ;;  %v1528_v41 = vpop.f32.mrf.mxu1 }
 0x320   : > { %v1655_v29 = vpop.f32.mrf.mxu2 }
 0x321   : > { %v1805_v45 = vpop.f32.mrf.mxu3  ;;  %v1703_v58 = vadd.f32 %v1655_v29, %v1552_v46 }
 0x323   : > { %v1853_v61 = vadd.f32 %v1805_v45, %v1703_v58 }
 0x325   : > { %v2003_v38 = vadd.f32 %v1955_v44, %v1853_v61  ;;  %v1958_v51 = vpop.f32.mrf.mxu0  ;;  %v1558_v44 = vadd.f32 %v1522_v4, %v3334_v0 }
 0x327   : > { %v2019_v37 = vmax.f32 %v2003_v38, 0.0  ;;  %v1559_v38 = vadd.f32 %v1525_v10, %v3343_v53 }
 0x328   : > { %v1658_v56 = vpop.f32.mrf.mxu2 }
 0x329   : > { %v1808_v55 = vpop.f32.mrf.mxu3  ;;  %v1704_v2 = vadd.f32 %v1658_v56, %v1553_v8  ;;  %2547 = vmatmul.msk.f32.vlgmr.msra.gmra.mxu1 %vm589_vm2, %v2019_v37 }
 0x32b   : > { %v1854_v12 = vadd.f32 %v1808_v55, %v1704_v2 }
 0x32d   : > { %v2004_v18 = vadd.f32 %v1958_v51, %v1854_v12  ;;  %v1961_v15 = vpop.f32.mrf.mxu0  ;;  %v1531_v51 = vpop.f32.mrf.mxu1 }
 0x32f   : > { %v2020_v14 = vmax.f32 %v2004_v18, 0.0  ;;  %v1560_v18 = vadd.f32 %v1528_v41, %v3352_v33 }
 0x330   : > { %v1661_v20 = vpop.f32.mrf.mxu2 }
 0x331   : > { %v1811_v21 = vpop.f32.mrf.mxu3  ;;  %v1705_v3 = vadd.f32 %v1661_v20, %v1554_v5  ;;  %2548 = vmatmul.msk.f32.gmra.mxu1 %vm589_vm2, %v2020_v14 }
 0x333   : > { %v1855_v6 = vadd.f32 %v1811_v21, %v1705_v3 }
 0x335   : > { %v2005_v17 = vadd.f32 %v1961_v15, %v1855_v6  ;;  %v1964_v34 = vpop.f32.mrf.mxu0  ;;  %v1534_v14 = vpop.f32.mrf.mxu1  ;;  %v1561_v6 = vadd.f32 %v1531_v51, %v3361_v50 }
 0x337   : > { %v2021_v63 = vmax.f32 %v2005_v17, 0.0 }
 0x338   : > { %v1664_v19 = vpop.f32.mrf.mxu2 }
 0x339   : > { %v1814_v7 = vpop.f32.mrf.mxu3  ;;  %v1706_v27 = vadd.f32 %v1664_v19, %v1555_v42  ;;  %2549 = vmatmul.msk.f32.gmra.mxu1 %vm589_vm2, %v2021_v63 }
 0x33b   : > { %v1856_v49 = vadd.f32 %v1814_v7, %v1706_v27  ;;  %v1562_v27 = vadd.f32 %v1534_v14, %v3370_v57 }
 0x33d   : > { %v2006_v28 = vadd.f32 %v1964_v34, %v1856_v49  ;;  %v1967_v48 = vpop.f32.mrf.mxu0  ;;  %v1537_v19 = vpop.f32.mrf.mxu1 }
 0x33f   : > { %v2022_v16 = vmax.f32 %v2006_v28, 0.0 }
 0x340   : > { %v1667_v23 = vpop.f32.mrf.mxu2 }
 0x341   : > { %v1817_v31 = vpop.f32.mrf.mxu3  ;;  %v1707_v32 = vadd.f32 %v1667_v23, %v1556_v22  ;;  %2550 = vmatmul.msk.f32.gmra.mxu1 %vm589_vm2, %v2022_v16 }
 0x343   : > { %v1857_v11 = vadd.f32 %v1817_v31, %v1707_v32  ;;  %v1563_v32 = vadd.f32 %v1537_v19, %v3379_v59 }
 0x345   : > { %v2007_v30 = vadd.f32 %v1967_v48, %v1857_v11  ;;  %v1970_v24 = vpop.f32.mrf.mxu0  ;;  %v1540_v50 = vpop.f32.mrf.mxu1 }
 0x347   : > { %v2023_v35 = vmax.f32 %v2007_v30, 0.0 }
 0x348   : > { %v1670_v54 = vpop.f32.mrf.mxu2 }
 0x349   : > { %v1820_v13 = vpop.f32.mrf.mxu3  ;;  %v1708_v9 = vadd.f32 %v1670_v54, %v1557_v62  ;;  %2551 = vmatmul.msk.f32.gmra.mxu1 %vm589_vm2, %v2023_v35  ;;  %v1564_v54 = vadd.f32 %v1540_v50, %v3388_v26 }
 0x34b   : > { %v1858_v40 = vadd.f32 %v1820_v13, %v1708_v9 }
 0x34d   : > { %v2008_v43 = vadd.f32 %v1970_v24, %v1858_v40  ;;  %v1973_v39 = vpop.f32.mrf.mxu0  ;;  %v1543_v13 = vpop.f32.mrf.mxu1 }
 0x34f   : > { %v2024_v46 = vmax.f32 %v2008_v43, 0.0 }
 0x350   : > { %v1673_v29 = vpop.f32.mrf.mxu2 }
 0x351   : > { %v1823_v45 = vpop.f32.mrf.mxu3  ;;  %v1709_v58 = vadd.f32 %v1673_v29, %v1558_v44  ;;  %2552 = vmatmul.msk.f32.gmra.mxu1 %vm589_vm2, %v2024_v46  ;;  %v1565_v46 = vadd.f32 %v1543_v13, %v3397_v25 }
 0x353   : > { %v1859_v61 = vadd.f32 %v1823_v45, %v1709_v58 }
 0x355   : > { %v2009_v47 = vadd.f32 %v1973_v39, %v1859_v61  ;;  %v1976_v52 = vpop.f32.mrf.mxu0 }
 0x357   : > { %v2025_v8 = vmax.f32 %v2009_v47, 0.0  ;;  %v1546_v47 = vpop.f32.mrf.mxu1 }
 0x358   : > { %v1676_v37 = vpop.f32.mrf.mxu2 }
 0x359   : > { %v1826_v56 = vpop.f32.mrf.mxu3  ;;  %v1710_v55 = vadd.f32 %v1676_v37, %v1559_v38  ;;  %2553 = vmatmul.msk.f32.gmra.mxu1 %vm589_vm2, %v2025_v8  ;;  %v1566_v38 = vadd.f32 %v1546_v47, %v3403_v36 }
 0x35b   : > { %v1860_v2 = vadd.f32 %v1826_v56, %v1710_v55 }
 0x35d   : > { %v2010_v0 = vadd.f32 %v1976_v52, %v1860_v2  ;;  %v1979_v12 = vpop.f32.mrf.mxu0 }
 0x35f   : > { %v2026_v15 = vmax.f32 %v2010_v0, 0.0  ;;  %v1549_v25 = vpop.f32.mrf.mxu1 }
 0x360   : > { %v1679_v5 = vpop.f32.mrf.mxu2 }
 0x361   : > { %v1829_v60 = vpop.f32.mrf.mxu3  ;;  %v1711_v20 = vadd.f32 %v1679_v5, %v1560_v18  ;;  %2554 = vmatmul.msk.f32.gmra.mxu1 %vm589_vm2, %v2026_v15 }
 0x363   : > { %v1861_v53 = vadd.f32 %v1829_v60, %v1711_v20 }
 0x365   : > { %v2011_v21 = vadd.f32 %v1979_v12, %v1861_v53  ;;  %v1982_v3 = vpop.f32.mrf.mxu0  ;;  %v1567_v12 = vadd.f32 %v1549_v25, %v3409_v1  ;;  %v3574_v25 = vld [vmem:[#allocation8_spill] sm:$0xff] }
 0x367   : > { %v2027_v17 = vmax.f32 %v2011_v21, 0.0 }
 0x368   : > { %v1682_v34 = vpop.f32.mrf.mxu2 }
 0x369   : > { %v1832_v42 = vpop.f32.mrf.mxu3  ;;  %v1712_v63 = vadd.f32 %v1682_v34, %v1561_v6  ;;  %2555 = vmatmul.msk.f32.gmra.mxu1 %vm589_vm2, %v2027_v17  ;;  %v3562_v34 = vld [vmem:[#allocation9_spill] sm:$0xff] }
 0x36b   : > { %v1862_v33 = vadd.f32 %v1832_v42, %v1712_v63 }
 0x36d   : > { %v2012_v7 = vadd.f32 %v1982_v3, %v1862_v33  ;;  %v1985_v4 = vpop.f32.mrf.mxu0  ;;  %v3561_v3 = vld [vmem:[#allocation5_spill] sm:$0xff] }
 0x36e   : > { %v3563_v33 = vld [vmem:[#allocation13_spill] sm:$0xff] }
 0x36f   : > { %v2028_v49 = vmax.f32 %v2012_v7, 0.0 }
 0x370   : > { %v1685_v28 = vpop.f32.mrf.mxu2 }
 0x371   : > { %v1835_v48 = vpop.f32.mrf.mxu3  ;;  %v1713_v22 = vadd.f32 %v1685_v28, %v1562_v27  ;;  %2556 = vmatmul.msk.f32.gmra.mxu1 %vm589_vm2, %v2028_v49  ;;  %v3564_v49 = vld [vmem:[#allocation17_spill] sm:$0xff] }
 0x373   : > { %v1863_v16 = vadd.f32 %v1835_v48, %v1713_v22 }
 0x375   : > { %v2013_v23 = vadd.f32 %v1985_v4, %v1863_v16  ;;  %v1988_v31 = vpop.f32.mrf.mxu0  ;;  %v3565_v16 = vld [vmem:[#allocation6_spill] sm:$0xff] }
 0x377   : > { %v2029_v10 = vmax.f32 %v2013_v23, 0.0 }
 0x378   : > { %v1688_v11 = vpop.f32.mrf.mxu2 }
 0x379   : > { %v1838_v30 = vpop.f32.mrf.mxu3  ;;  %v1714_v24 = vadd.f32 %v1688_v11, %v1563_v32  ;;  %2557 = vmatmul.msk.f32.gmra.mxu1 %vm589_vm2, %v2029_v10  ;;  %v3566_v32 = vld [vmem:[#allocation10_spill] sm:$0xff] }
 0x37b   : > { %v1864_v62 = vadd.f32 %v1838_v30, %v1714_v24  ;;  %v3567_v24 = vld [vmem:[#allocation14_spill] sm:$0xff] }
 0x37d   : > { %v2014_v57 = vadd.f32 %v1988_v31, %v1864_v62  ;;  %v1991_v35 = vpop.f32.mrf.mxu0 }
 0x37f   : > { %v2030_v9 = vmax.f32 %v2014_v57, 0.0 }
 0x380   : > { %v1691_v40 = vpop.f32.mrf.mxu2 }
 0x381   : > { %v1841_v41 = vpop.f32.mrf.mxu3  ;;  %v1715_v43 = vadd.f32 %v1691_v40, %v1564_v54  ;;  %2558 = vmatmul.msk.f32.gmra.mxu1 %vm589_vm2, %v2030_v9  ;;  %v3568_v54 = vld [vmem:[#allocation18_spill] sm:$0xff] }
 0x383   : > { %v1865_v39 = vadd.f32 %v1841_v41, %v1715_v43  ;;  %v3569_v41 = vld [vmem:[#allocation3_spill] sm:$0xff] }
 0x385   : > { %v2015_v59 = vadd.f32 %v1991_v35, %v1865_v39  ;;  %v1994_v44 = vpop.f32.mrf.mxu0 }
 0x387   : > { %v2031_v29 = vmax.f32 %v2015_v59, 0.0 }
 0x388   : > { %v1694_v45 = vpop.f32.mrf.mxu2 }
 0x389   : > { %v1844_v58 = vpop.f32.mrf.mxu3  ;;  %v1716_v61 = vadd.f32 %v1694_v45, %v1565_v46  ;;  %2559 = vmatmul.msk.f32.gmra.mxu1 %vm589_vm2, %v2031_v29 }
 0x38b   : > { %v1866_v26 = vadd.f32 %v1844_v58, %v1716_v61  ;;  %v3571_v58 = vld [vmem:[#allocation11_spill] sm:$0xff] }
 0x38d   : > { %v2016_v52 = vadd.f32 %v1994_v44, %v1866_v26  ;;  %v1997_v8 = vpop.f32.mrf.mxu0  ;;  %v3570_v44 = vld [vmem:[#allocation7_spill] sm:$0xff] }
 0x38f   : > { %v2032_v51 = vmax.f32 %v2016_v52, 0.0  ;;  %v3572_v52 = vld [vmem:[#allocation15_spill] sm:$0xff] }
 0x390   : > { %v1697_v37 = vpop.f32.mrf.mxu2 }
 0x391   : > { %v1847_v56 = vpop.f32.mrf.mxu3  ;;  %v1717_v55 = vadd.f32 %v1697_v37, %v1566_v38  ;;  %2560 = vmatmul.msk.f32.gmra.mxu1 %vm589_vm2, %v2032_v51  ;;  %v3573_v37 = vld [vmem:[#allocation4_spill] sm:$0xff] }
 0x393   : > { %v1867_v2 = vadd.f32 %v1847_v56, %v1717_v55 }
 0x395   : > { %v2017_v0 = vadd.f32 %v1997_v8, %v1867_v2  ;;  %v2000_v36 = vpop.f32.mrf.mxu0 }
 0x397   : > { %v2033_v18 = vmax.f32 %v2017_v0, 0.0 }
 0x398   : > { %v1700_v15 = vpop.f32.mrf.mxu2 }
 0x399   : > { %v1850_v5 = vpop.f32.mrf.mxu3  ;;  %v1718_v60 = vadd.f32 %v1700_v15, %v1567_v12  ;;  %2561 = vmatmul.msk.f32.gmra.mxu1 %vm589_vm2, %v2033_v18  ;;  %v3575_v15 = vld [vmem:[#allocation12_spill] sm:$0xff] }
 0x39b   : > { %v1868_v14 = vadd.f32 %v1850_v5, %v1718_v60 }
 0x39d   : > { %v2018_v20 = vadd.f32 %v2000_v36, %v1868_v14  ;;  %v3576_v14 = vld [vmem:[#allocation16_spill] sm:$0xff] }
 0x39f   : > { %v2034_v53 = vmax.f32 %v2018_v20, 0.0 }
 0x3a1   : > { %2562 = vmatmul.msk.f32.gmra.mxu1 %vm589_vm2, %v2034_v53 }
 0x3a6   : > { %v2104_v21 = vpop.f32.mrf.mxu1 }
 0x3a7   : > { %v2105_v6 = vadd.f32 %v2104_v21, %v3561_v3 }
 0x3a9   : > { %v2152_v17 = vmax.f32 %v2105_v6, 0.0 }
 0x3ab   : > { %2168 = vst.msk [vmem:[%s2770_s20] sm:$0xff] %vm458_vm1, %v2152_v17 }
 0x3ae   : > { %v2107_v1 = vpop.f32.mrf.mxu1 }
 0x3af   : > { %v2108_v42 = vadd.f32 %v2107_v1, %v3562_v34 }
 0x3b1   : > { %v2153_v63 = vmax.f32 %v2108_v42, 0.0 }
 0x3b3   : > { %2169 = vst.msk [vmem:[%s2770_s20 + $0x8] sm:$0xff] %vm458_vm1, %v2153_v63 }
 0x3b6   : > { %v2110_v19 = vpop.f32.mrf.mxu1 }
 0x3b7   : > { %v2111_v7 = vadd.f32 %v2110_v19, %v3563_v33 }
 0x3b9   : > { %v2154_v4 = vmax.f32 %v2111_v7, 0.0 }
 0x3bb   : > { %2170 = vst.msk [vmem:[%s2770_s20 + $0x10] sm:$0xff] %vm458_vm1, %v2154_v4 }
 0x3be   : > { %v2113_v27 = vpop.f32.mrf.mxu1 }
 0x3bf   : > { %v2114_v28 = vadd.f32 %v2113_v27, %v3564_v49 }
 0x3c1   : > { %v2155_v48 = vmax.f32 %v2114_v28, 0.0 }
 0x3c3   : > { %2171 = vst.msk [vmem:[%s2770_s20 + $0x18] sm:$0xff] %vm458_vm1, %v2155_v48 }
 0x3c6   : > { %v2116_v22 = vpop.f32.mrf.mxu1 }
 0x3c7   : > { %v2117_v50 = vadd.f32 %v2116_v22, %v3565_v16 }
 0x3c9   : > { %v2156_v23 = vmax.f32 %v2117_v50, 0.0 }
 0x3cb   : > { %2172 = vst.msk [vmem:[%s2770_s20 + $0x20] sm:$0xff] %vm458_vm1, %v2156_v23 }
 0x3ce   : > { %v2119_v31 = vpop.f32.mrf.mxu1 }
 0x3cf   : > { %v2120_v10 = vadd.f32 %v2119_v31, %v3566_v32 }
 0x3d1   : > { %v2157_v11 = vmax.f32 %v2120_v10, 0.0 }
 0x3d3   : > { %2173 = vst.msk [vmem:[%s2770_s20 + $0x28] sm:$0xff] %vm458_vm1, %v2157_v11 }
 0x3d6   : > { %v2122_v30 = vpop.f32.mrf.mxu1 }
 0x3d7   : > { %v2123_v62 = vadd.f32 %v2122_v30, %v3567_v24 }
 0x3d9   : > { %v2158_v57 = vmax.f32 %v2123_v62, 0.0 }
 0x3db   : > { %2174 = vst.msk [vmem:[%s2770_s20 + $0x30] sm:$0xff] %vm458_vm1, %v2158_v57 }
 0x3de   : > { %v2125_v35 = vpop.f32.mrf.mxu1 }
 0x3df   : > { %v2126_v13 = vadd.f32 %v2125_v35, %v3568_v54 }
 0x3e1   : > { %v2159_v9 = vmax.f32 %v2126_v13, 0.0 }
 0x3e3   : > { %2175 = vst.msk [vmem:[%s2770_s20 + $0x38] sm:$0xff] %vm458_vm1, %v2159_v9 }
 0x3e6   : > { %v2128_v40 = vpop.f32.mrf.mxu1 }
 0x3e7   : > { %v2129_v43 = vadd.f32 %v2128_v40, %v3569_v41 }
 0x3e9   : > { %v2160_v39 = vmax.f32 %v2129_v43, 0.0 }
 0x3eb   : > { %2176 = vst.msk [vmem:[%s2770_s20 + $0x40] sm:$0xff] %vm458_vm1, %v2160_v39 }
 0x3ee   : > { %v2131_v59 = vpop.f32.mrf.mxu1 }
 0x3ef   : > { %v2132_v46 = vadd.f32 %v2131_v59, %v3570_v44 }
 0x3f1   : > { %v2161_v29 = vmax.f32 %v2132_v46, 0.0 }
 0x3f3   : > { %2177 = vst.msk [vmem:[%s2770_s20 + $0x48] sm:$0xff] %vm458_vm1, %v2161_v29 }
 0x3f6   : > { %v2134_v45 = vpop.f32.mrf.mxu1 }
 0x3f7   : > { %v2135_v61 = vadd.f32 %v2134_v45, %v3571_v58 }
 0x3f9   : > { %v2162_v47 = vmax.f32 %v2135_v61, 0.0 }
 0x3fb   : > { %2178 = vst.msk [vmem:[%s2770_s20 + $0x50] sm:$0xff] %vm458_vm1, %v2162_v47 }
 0x3fe   : > { %v2137_v26 = vpop.f32.mrf.mxu1 }
 0x3ff   : > { %v2138_v38 = vadd.f32 %v2137_v26, %v3572_v52 }
 0x401   : > { %v2163_v51 = vmax.f32 %v2138_v38, 0.0 }
 0x403   : > { %2179 = vst.msk [vmem:[%s2770_s20 + $0x58] sm:$0xff] %vm458_vm1, %v2163_v51 }
 0x406   : > { %v2140_v8 = vpop.f32.mrf.mxu1 }
 0x407   : > { %v2141_v56 = vadd.f32 %v2140_v8, %v3573_v37 }
 0x409   : > { %v2164_v55 = vmax.f32 %v2141_v56, 0.0 }
 0x40b   : > { %2180 = vst.msk [vmem:[%s2770_s20 + $0x60] sm:$0xff] %vm458_vm1, %v2164_v55 }
 0x40e   : > { %v2143_v2 = vpop.f32.mrf.mxu1 }
 0x40f   : > { %v2144_v0 = vadd.f32 %v2143_v2, %v3574_v25 }
 0x411   : > { %v2165_v12 = vmax.f32 %v2144_v0, 0.0 }
 0x413   : > { %2181 = vst.msk [vmem:[%s2770_s20 + $0x68] sm:$0xff] %vm458_vm1, %v2165_v12 }
 0x416   : > { %v2146_v18 = vpop.f32.mrf.mxu1 }
 0x417   : > { %v2147_v5 = vadd.f32 %v2146_v18, %v3575_v15 }
 0x419   : > { %v2166_v60 = vmax.f32 %v2147_v5, 0.0 }
 0x41b   : > { %2182 = vst.msk [vmem:[%s2770_s20 + $0x70] sm:$0xff] %vm458_vm1, %v2166_v60 }
 0x41e   : > { %v2149_v36 = vpop.f32.mrf.mxu1 }
 0x41f   : > { %v2150_v20 = vadd.f32 %v2149_v36, %v3576_v14 }
 0x421   : > { %v2167_v53 = vmax.f32 %v2150_v20, 0.0 }
 0x423   : > { %2183 = vst.msk [vmem:[%s2770_s20 + $0x78] sm:$0xff] %vm458_vm1, %v2167_v53 }
 0x424 PF: > { %s16_s25 = sadd.s32 1, %s2655_s25   ;;  %s3577_s21 = smov %s2647_s23 }
 0x425   : > { %p13_p0 = scmp.ge.s32.totalorder %s16_s25, 6   ;;  %s3578_s22 = smov %s2651_s24 }
 0x426   : > { %s3579_s23 = smov %s3582_s26  ;;  %s3580_s24 = smov %s3586_s27 }
 0x427   :  { %15 = sbr.rel (!%p13_p0) target bundleno = 3 (0x3), region = 108 }

</bundles_post_ra>
